<compile_context>
chip_gen: v5e
topology: v5e:2x2
jax: 0.10.0
libtpu: 0.0.40
codegen_flags: <defaults>
</compile_context>

<pallas_src>
import functools

import jax
import jax.numpy as jnp
from jax.experimental import pallas as pl
from jax.experimental.pallas import tpu as pltpu


# ----------------------------- Pallas kernels ------------------------------ #

def _branch_kernel(x_ref, w1_ref, b1_ref, w2_ref, b2_ref, o_ref,
                   h1_s, h1p_s, h2_s, *, K, Cin, C1, C2, L1, L1p, L2, L2p):
    """One batch element: conv1+ReLU, maxpool3, conv2+ReLU, maxpool3.

    x_ref:  (L, Cin)        channels-last input slab (VMEM)
    w1_ref: (K*Cin, C1)     conv1 weight, tap-major / channel-minor rows
    w2_ref: (K*C1, C2)      conv2 weight
    o_ref:  (L2p, C2)       pooled conv2 output (time-major, channels-last)
    h1_s/h1p_s/h2_s: VMEM scratch for the intermediates.
    """
    # ---- conv1 (stride 2, K taps) + bias + ReLU --------------------------- #
    acc = jnp.zeros((L1, C1), jnp.float32)
    for k in range(K):                                   # static unroll (K=5)
        xk = x_ref[pl.ds(k, L1, stride=2), :]            # (L1, Cin) strided tap
        acc = acc + jnp.dot(xk, w1_ref[k * Cin:(k + 1) * Cin, :],
                            preferred_element_type=jnp.float32)
    h1_s[...] = jnp.maximum(acc + b1_ref[...], 0.0)

    # ---- maxpool1 (kernel 3, stride 3, floor) ------------------------------ #
    h1p_s[...] = jnp.maximum(
        jnp.maximum(h1_s[pl.ds(0, L1p, stride=3), :],
                    h1_s[pl.ds(1, L1p, stride=3), :]),
        h1_s[pl.ds(2, L1p, stride=3), :])

    # ---- conv2 (stride 2, K taps) + bias + ReLU ---------------------------- #
    acc2 = jnp.zeros((L2, C2), jnp.float32)
    for k in range(K):
        hk = h1p_s[pl.ds(k, L2, stride=2), :]            # (L2, C1)
        acc2 = acc2 + jnp.dot(hk, w2_ref[k * C1:(k + 1) * C1, :],
                              preferred_element_type=jnp.float32)
    h2_s[...] = jnp.maximum(acc2 + b2_ref[...], 0.0)

    # ---- maxpool2 -> output block ------------------------------------------ #
    # (Dropout after this point is identity in eval mode.)
    o_ref[...] = jnp.maximum(
        jnp.maximum(h2_s[pl.ds(0, L2p, stride=3), :],
                    h2_s[pl.ds(1, L2p, stride=3), :]),
        h2_s[pl.ds(2, L2p, stride=3), :]).astype(o_ref.dtype)


def _fcn_kernel(f_ref, w1_ref, b1_ref, w2_ref, b2_ref, o_ref):
    """Fused Linear(1024,32)+ReLU+Linear(32,num_classes)."""
    h = jnp.dot(f_ref[...], w1_ref[...], preferred_element_type=jnp.float32)
    h = jnp.maximum(h + b1_ref[...], 0.0)
    out = jnp.dot(h, w2_ref[...], preferred_element_type=jnp.float32) + b2_ref[...]
    o_ref[...] = out.astype(o_ref.dtype)


# ------------------------------ wrappers ----------------------------------- #

def branch_forward(x_blc, w1f, b1, w2f, b2, K=5):
    """x_blc: (B, L, Cin) channels-last.  Returns (B, L2p, 64) pooled features."""
    B, L, Cin = x_blc.shape
    C1 = w1f.shape[1]
    C2 = w2f.shape[1]
    L1 = (L - K) // 2 + 1            # Conv1d(k=5, stride=2), no padding
    L1p = (L1 - 3) // 3 + 1          # MaxPool1d(3) floor mode
    L2 = (L1p - K) // 2 + 1
    L2p = (L2 - 3) // 3 + 1

    kern = functools.partial(_branch_kernel, K=K, Cin=Cin, C1=C1, C2=C2,
                             L1=L1, L1p=L1p, L2=L2, L2p=L2p)
    return pl.pallas_call(
        kern,
        out_shape=jax.ShapeDtypeStruct((B, L2p, C2), jnp.float32),
        grid=(B,),
        in_specs=[
            pl.BlockSpec((None, L, Cin), lambda b: (b, 0, 0)),   # per-sample slab
            pl.BlockSpec((K * Cin, C1), lambda b: (0, 0)),       # weights stay resident
            pl.BlockSpec((1, C1), lambda b: (0, 0)),
            pl.BlockSpec((K * C1, C2), lambda b: (0, 0)),
            pl.BlockSpec((1, C2), lambda b: (0, 0)),
        ],
        out_specs=pl.BlockSpec((None, L2p, C2), lambda b: (b, 0, 0)),
        scratch_shapes=[
            pltpu.VMEM((L1, C1), jnp.float32),    # conv1+relu
            pltpu.VMEM((L1p, C1), jnp.float32),   # pool1
            pltpu.VMEM((L2, C2), jnp.float32),    # conv2+relu
        ],
        compiler_params=pltpu.CompilerParams(
            dimension_semantics=("parallel",)),   # batch axis -> both TCs on v7x
    )(x_blc, w1f, b1, w2f, b2)


def fcn_forward(feat, fw1, fb1, fw2, fb2):
    """feat: (B, F).  Fused 2-layer MLP in a single pallas_call."""
    B, F = feat.shape
    H = fw1.shape[1]
    NC = fw2.shape[1]
    return pl.pallas_call(
        _fcn_kernel,
        out_shape=jax.ShapeDtypeStruct((B, NC), jnp.float32),
        grid=(1,),
        in_specs=[
            pl.BlockSpec((B, F), lambda i: (0, 0)),
            pl.BlockSpec((F, H), lambda i: (0, 0)),
            pl.BlockSpec((1, H), lambda i: (0, 0)),
            pl.BlockSpec((H, NC), lambda i: (0, 0)),
            pl.BlockSpec((1, NC), lambda i: (0, 0)),
        ],
        out_specs=pl.BlockSpec((B, NC), lambda i: (0, 0)),
    )(feat, fw1, fb1, fw2, fb2)


def convnet_forward(x_ncl, params):
    """x_ncl: PyTorch-style (B, C, L) float32 -> (B, num_classes)."""
    x_blc = jnp.transpose(x_ncl, (0, 2, 1)).astype(jnp.float32)   # (B, L, C)
    w1f, b1, w2f, b2 = params["cnn"]
    feat3 = branch_forward(x_blc, w1f, b1, w2f, b2, K=5)          # (B, L2p, 64)
    B = feat3.shape[0]
    feat = feat3.reshape(B, -1)        # free contiguous reshape -> (B, 64*L2p)
    fw1, fb1, fw2, fb2 = params["fcn"]
    assert feat.shape[1] == fw1.shape[0], (feat.shape, fw1.shape)
    return fcn_forward(feat, fw1, fb1, fw2, fb2)


# ------------------------------ parameter init ----------------------------- #

def init_params(key, cin, num_classes=2, K=5, l2p=16):
    """Random params in PyTorch layout, converted ONCE to kernel layouts."""
    keys = jax.random.split(key, 8)

    def nrm(k, shape, scale):
        return jax.random.normal(k, shape, jnp.float32) * scale

    # torch layouts
    w1t = nrm(keys[0], (32, cin, K), 1.0 / (cin * K) ** 0.5)   # Conv1d(cin->32, 5)
    b1 = nrm(keys[1], (32,), 0.01)
    w2t = nrm(keys[2], (64, 32, K), 1.0 / (32 * K) ** 0.5)     # Conv1d(32->64, 5)
    b2 = nrm(keys[3], (64,), 0.01)
    fc1t = nrm(keys[4], (32, 64 * l2p), 1.0 / (64 * l2p) ** 0.5)  # Linear(1024, 32)
    fb1 = nrm(keys[5], (32,), 0.01)
    fc2t = nrm(keys[6], (num_classes, 32), 1.0 / 32 ** 0.5)       # Linear(32, nc)
    fb2 = nrm(keys[7], (num_classes,), 0.01)

    # kernel layouts (done once here; zero per-forward cost)
    # conv: w_f[k*Cin + ci, co] = w_torch[co, ci, k]
    w1f = jnp.transpose(w1t, (2, 1, 0)).reshape(K * cin, 32)
    w2f = jnp.transpose(w2t, (2, 1, 0)).reshape(K * 32, 64)
    # FC1: reorder columns so it consumes the kernel's (t, channel)-major flatten
    # instead of PyTorch's (channel, t)-major flatten:
    #   fw1[t*64 + co, j] = fc1t[j, co*l2p + t]
    fw1 = jnp.transpose(fc1t.reshape(32, 64, l2p), (2, 1, 0)).reshape(64 * l2p, 32)
    fw2 = fc2t.T                                                   # (32, nc)

    return {
        "cnn": (w1f, b1.reshape(1, 32), w2f, b2.reshape(1, 64)),
        "fcn": (fw1, fb1.reshape(1, 32), fw2, fb2.reshape(1, num_classes)),
    }


# ----------------------------------- main ----------------------------------- #

if __name__ == "__main__":
    key = jax.random.PRNGKey(0)
    kx, kp = jax.random.split(key)

    # L=600 is what Linear(in_features=1024) implies:
    # conv1(s=2,k=5): 298 -> pool3: 99 -> conv2: 48 -> pool3: 16; 64*16 = 1024.
    B, C, L = 2, 4, 600
    x = jax.random.normal(kx, (B, C, L), jnp.float32)
    params = init_params(kp, C, num_classes=2)

    fwd = jax.jit(lambda xx: convnet_forward(xx, params))
    out = jax.block_until_ready(fwd(x))

    assert out.shape == (B, 2), out.shape
    assert not bool(jnp.isnan(out).any())
    print("KERNEL_OK")
</pallas_src>

<mosaic_0001>
module attributes {stable_mosaic.version = 11 : i64} {
  func.func @_branch_kernel(%arg0: i32, %arg1: memref<1x600x4xf32, #tpu.memory_space<vmem>>, %arg2: memref<20x32xf32, #tpu.memory_space<vmem>>, %arg3: memref<1x32xf32, #tpu.memory_space<vmem>>, %arg4: memref<160x64xf32, #tpu.memory_space<vmem>>, %arg5: memref<1x64xf32, #tpu.memory_space<vmem>>, %arg6: memref<1x16x64xf32, #tpu.memory_space<vmem>>, %arg7: memref<298x32xf32, #tpu.memory_space<vmem>>, %arg8: memref<99x32xf32, #tpu.memory_space<vmem>>, %arg9: memref<48x64xf32, #tpu.memory_space<vmem>>) attributes {dimension_semantics = [#tpu.dimension_semantics<parallel>], iteration_bounds = array<i64: 2>, scalar_prefetch = 0 : i64, scratch_operands = 3 : i64, tpu.core_type = #tpu.core_type<tc>, window_params = [{transform_indices = @transform_0, window_bounds = array<i64: 1, 600, 4>}, {pipeline_mode = #tpu.pipeline_mode<synchronous>, transform_indices = @transform_1, window_bounds = array<i64: 20, 32>}, {pipeline_mode = #tpu.pipeline_mode<synchronous>, transform_indices = @transform_2, window_bounds = array<i64: 1, 32>}, {pipeline_mode = #tpu.pipeline_mode<synchronous>, transform_indices = @transform_3, window_bounds = array<i64: 160, 64>}, {pipeline_mode = #tpu.pipeline_mode<synchronous>, transform_indices = @transform_4, window_bounds = array<i64: 1, 64>}, {transform_indices = @transform_5, window_bounds = array<i64: 1, 16, 64>}]} {
    %cst = arith.constant 0.000000e+00 : f32
    %0 = vector.broadcast %cst : f32 to vector<298x32xf32>
    %c0 = arith.constant 0 : index
    %c0_0 = arith.constant 0 : index
    %c0_1 = arith.constant 0 : index
    %1 = tpu.strided_load %arg1[%c0, %c0_0, %c0_1] {strides = array<i32: 1, 2, 1>} : memref<1x600x4xf32, #tpu.memory_space<vmem>>, vector<1x298x4xf32>
    %2 = vector.shape_cast %1 : vector<1x298x4xf32> to vector<298x4xf32>
    %c0_2 = arith.constant 0 : index
    %c0_3 = arith.constant 0 : index
    %3 = vector.load %arg2[%c0_2, %c0_3] : memref<20x32xf32, #tpu.memory_space<vmem>>, vector<4x32xf32>
    %cst_4 = arith.constant dense<0.000000e+00> : vector<298x32xf32>
    %4 = tpu.matmul %2, %3, %cst_4 {dimension_numbers = #tpu.dot_dimension_numbers<[1], [0], [0], [1], [0, 0, 1, 1], [], []>} : vector<298x4xf32>, vector<4x32xf32>, vector<298x32xf32> -> vector<298x32xf32>
    %5 = arith.addf %0, %4 : vector<298x32xf32>
    %c0_5 = arith.constant 0 : index
    %c1 = arith.constant 1 : index
    %c0_6 = arith.constant 0 : index
    %6 = tpu.strided_load %arg1[%c0_5, %c1, %c0_6] {strides = array<i32: 1, 2, 1>} : memref<1x600x4xf32, #tpu.memory_space<vmem>>, vector<1x298x4xf32>
    %7 = vector.shape_cast %6 : vector<1x298x4xf32> to vector<298x4xf32>
    %c4 = arith.constant 4 : index
    %c0_7 = arith.constant 0 : index
    %8 = vector.load %arg2[%c4, %c0_7] : memref<20x32xf32, #tpu.memory_space<vmem>>, vector<4x32xf32>
    %cst_8 = arith.constant dense<0.000000e+00> : vector<298x32xf32>
    %9 = tpu.matmul %7, %8, %cst_8 {dimension_numbers = #tpu.dot_dimension_numbers<[1], [0], [0], [1], [0, 0, 1, 1], [], []>} : vector<298x4xf32>, vector<4x32xf32>, vector<298x32xf32> -> vector<298x32xf32>
    %10 = arith.addf %5, %9 : vector<298x32xf32>
    %c0_9 = arith.constant 0 : index
    %c2 = arith.constant 2 : index
    %c0_10 = arith.constant 0 : index
    %11 = tpu.strided_load %arg1[%c0_9, %c2, %c0_10] {strides = array<i32: 1, 2, 1>} : memref<1x600x4xf32, #tpu.memory_space<vmem>>, vector<1x298x4xf32>
    %12 = vector.shape_cast %11 : vector<1x298x4xf32> to vector<298x4xf32>
    %c8 = arith.constant 8 : index
    %c0_11 = arith.constant 0 : index
    %13 = vector.load %arg2[%c8, %c0_11] : memref<20x32xf32, #tpu.memory_space<vmem>>, vector<4x32xf32>
    %cst_12 = arith.constant dense<0.000000e+00> : vector<298x32xf32>
    %14 = tpu.matmul %12, %13, %cst_12 {dimension_numbers = #tpu.dot_dimension_numbers<[1], [0], [0], [1], [0, 0, 1, 1], [], []>} : vector<298x4xf32>, vector<4x32xf32>, vector<298x32xf32> -> vector<298x32xf32>
    %15 = arith.addf %10, %14 : vector<298x32xf32>
    %c0_13 = arith.constant 0 : index
    %c3 = arith.constant 3 : index
    %c0_14 = arith.constant 0 : index
    %16 = tpu.strided_load %arg1[%c0_13, %c3, %c0_14] {strides = array<i32: 1, 2, 1>} : memref<1x600x4xf32, #tpu.memory_space<vmem>>, vector<1x298x4xf32>
    %17 = vector.shape_cast %16 : vector<1x298x4xf32> to vector<298x4xf32>
    %c12 = arith.constant 12 : index
    %c0_15 = arith.constant 0 : index
    %18 = vector.load %arg2[%c12, %c0_15] : memref<20x32xf32, #tpu.memory_space<vmem>>, vector<4x32xf32>
    %cst_16 = arith.constant dense<0.000000e+00> : vector<298x32xf32>
    %19 = tpu.matmul %17, %18, %cst_16 {dimension_numbers = #tpu.dot_dimension_numbers<[1], [0], [0], [1], [0, 0, 1, 1], [], []>} : vector<298x4xf32>, vector<4x32xf32>, vector<298x32xf32> -> vector<298x32xf32>
    %20 = arith.addf %15, %19 : vector<298x32xf32>
    %c0_17 = arith.constant 0 : index
    %c4_18 = arith.constant 4 : index
    %c0_19 = arith.constant 0 : index
    %21 = tpu.strided_load %arg1[%c0_17, %c4_18, %c0_19] {strides = array<i32: 1, 2, 1>} : memref<1x600x4xf32, #tpu.memory_space<vmem>>, vector<1x298x4xf32>
    %22 = vector.shape_cast %21 : vector<1x298x4xf32> to vector<298x4xf32>
    %c16 = arith.constant 16 : index
    %c0_20 = arith.constant 0 : index
    %23 = vector.load %arg2[%c16, %c0_20] : memref<20x32xf32, #tpu.memory_space<vmem>>, vector<4x32xf32>
    %cst_21 = arith.constant dense<0.000000e+00> : vector<298x32xf32>
    %24 = tpu.matmul %22, %23, %cst_21 {dimension_numbers = #tpu.dot_dimension_numbers<[1], [0], [0], [1], [0, 0, 1, 1], [], []>} : vector<298x4xf32>, vector<4x32xf32>, vector<298x32xf32> -> vector<298x32xf32>
    %25 = arith.addf %20, %24 : vector<298x32xf32>
    %c0_22 = arith.constant 0 : index
    %c0_23 = arith.constant 0 : index
    %26 = vector.load %arg3[%c0_22, %c0_23] : memref<1x32xf32, #tpu.memory_space<vmem>>, vector<1x32xf32>
    %27 = vector.broadcast %26 : vector<1x32xf32> to vector<298x32xf32>
    %28 = arith.addf %25, %27 : vector<298x32xf32>
    %cst_24 = arith.constant 0.000000e+00 : f32
    %29 = vector.broadcast %cst_24 : f32 to vector<298x32xf32>
    %30 = arith.maximumf %28, %29 : vector<298x32xf32>
    %c0_25 = arith.constant 0 : index
    %c0_26 = arith.constant 0 : index
    %31 = vector.load %arg7[%c0_25, %c0_26] : memref<298x32xf32, #tpu.memory_space<vmem>>, vector<298x32xf32>
    tpu.vector_store %arg7[%c0_25, %c0_26], %30 {strides = array<i32>} : memref<298x32xf32, #tpu.memory_space<vmem>>, vector<298x32xf32>,
    %c0_27 = arith.constant 0 : index
    %c0_28 = arith.constant 0 : index
    %32 = tpu.strided_load %arg7[%c0_27, %c0_28] {strides = array<i32: 3, 1>} : memref<298x32xf32, #tpu.memory_space<vmem>>, vector<99x32xf32>
    %c1_29 = arith.constant 1 : index
    %c0_30 = arith.constant 0 : index
    %33 = tpu.strided_load %arg7[%c1_29, %c0_30] {strides = array<i32: 3, 1>} : memref<298x32xf32, #tpu.memory_space<vmem>>, vector<99x32xf32>
    %34 = arith.maximumf %32, %33 : vector<99x32xf32>
    %c2_31 = arith.constant 2 : index
    %c0_32 = arith.constant 0 : index
    %35 = tpu.strided_load %arg7[%c2_31, %c0_32] {strides = array<i32: 3, 1>} : memref<298x32xf32, #tpu.memory_space<vmem>>, vector<99x32xf32>
    %36 = arith.maximumf %34, %35 : vector<99x32xf32>
    %c0_33 = arith.constant 0 : index
    %c0_34 = arith.constant 0 : index
    %37 = vector.load %arg8[%c0_33, %c0_34] : memref<99x32xf32, #tpu.memory_space<vmem>>, vector<99x32xf32>
    tpu.vector_store %arg8[%c0_33, %c0_34], %36 {strides = array<i32>} : memref<99x32xf32, #tpu.memory_space<vmem>>, vector<99x32xf32>,
    %cst_35 = arith.constant 0.000000e+00 : f32
    %38 = vector.broadcast %cst_35 : f32 to vector<48x64xf32>
    %c0_36 = arith.constant 0 : index
    %c0_37 = arith.constant 0 : index
    %39 = tpu.strided_load %arg8[%c0_36, %c0_37] {strides = array<i32: 2, 1>} : memref<99x32xf32, #tpu.memory_space<vmem>>, vector<48x32xf32>
    %c0_38 = arith.constant 0 : index
    %c0_39 = arith.constant 0 : index
    %40 = vector.load %arg4[%c0_38, %c0_39] : memref<160x64xf32, #tpu.memory_space<vmem>>, vector<32x64xf32>
    %cst_40 = arith.constant dense<0.000000e+00> : vector<48x64xf32>
    %41 = tpu.matmul %39, %40, %cst_40 {dimension_numbers = #tpu.dot_dimension_numbers<[1], [0], [0], [1], [0, 0, 1, 1], [], []>} : vector<48x32xf32>, vector<32x64xf32>, vector<48x64xf32> -> vector<48x64xf32>
    %42 = arith.addf %38, %41 : vector<48x64xf32>
    %c1_41 = arith.constant 1 : index
    %c0_42 = arith.constant 0 : index
    %43 = tpu.strided_load %arg8[%c1_41, %c0_42] {strides = array<i32: 2, 1>} : memref<99x32xf32, #tpu.memory_space<vmem>>, vector<48x32xf32>
    %c32 = arith.constant 32 : index
    %c0_43 = arith.constant 0 : index
    %44 = vector.load %arg4[%c32, %c0_43] : memref<160x64xf32, #tpu.memory_space<vmem>>, vector<32x64xf32>
    %cst_44 = arith.constant dense<0.000000e+00> : vector<48x64xf32>
    %45 = tpu.matmul %43, %44, %cst_44 {dimension_numbers = #tpu.dot_dimension_numbers<[1], [0], [0], [1], [0, 0, 1, 1], [], []>} : vector<48x32xf32>, vector<32x64xf32>, vector<48x64xf32> -> vector<48x64xf32>
    %46 = arith.addf %42, %45 : vector<48x64xf32>
    %c2_45 = arith.constant 2 : index
    %c0_46 = arith.constant 0 : index
    %47 = tpu.strided_load %arg8[%c2_45, %c0_46] {strides = array<i32: 2, 1>} : memref<99x32xf32, #tpu.memory_space<vmem>>, vector<48x32xf32>
    %c64 = arith.constant 64 : index
    %c0_47 = arith.constant 0 : index
    %48 = vector.load %arg4[%c64, %c0_47] : memref<160x64xf32, #tpu.memory_space<vmem>>, vector<32x64xf32>
    %cst_48 = arith.constant dense<0.000000e+00> : vector<48x64xf32>
    %49 = tpu.matmul %47, %48, %cst_48 {dimension_numbers = #tpu.dot_dimension_numbers<[1], [0], [0], [1], [0, 0, 1, 1], [], []>} : vector<48x32xf32>, vector<32x64xf32>, vector<48x64xf32> -> vector<48x64xf32>
    %50 = arith.addf %46, %49 : vector<48x64xf32>
    %c3_49 = arith.constant 3 : index
    %c0_50 = arith.constant 0 : index
    %51 = tpu.strided_load %arg8[%c3_49, %c0_50] {strides = array<i32: 2, 1>} : memref<99x32xf32, #tpu.memory_space<vmem>>, vector<48x32xf32>
    %c96 = arith.constant 96 : index
    %c0_51 = arith.constant 0 : index
    %52 = vector.load %arg4[%c96, %c0_51] : memref<160x64xf32, #tpu.memory_space<vmem>>, vector<32x64xf32>
    %cst_52 = arith.constant dense<0.000000e+00> : vector<48x64xf32>
    %53 = tpu.matmul %51, %52, %cst_52 {dimension_numbers = #tpu.dot_dimension_numbers<[1], [0], [0], [1], [0, 0, 1, 1], [], []>} : vector<48x32xf32>, vector<32x64xf32>, vector<48x64xf32> -> vector<48x64xf32>
    %54 = arith.addf %50, %53 : vector<48x64xf32>
    %c4_53 = arith.constant 4 : index
    %c0_54 = arith.constant 0 : index
    %55 = tpu.strided_load %arg8[%c4_53, %c0_54] {strides = array<i32: 2, 1>} : memref<99x32xf32, #tpu.memory_space<vmem>>, vector<48x32xf32>
    %c128 = arith.constant 128 : index
    %c0_55 = arith.constant 0 : index
    %56 = vector.load %arg4[%c128, %c0_55] : memref<160x64xf32, #tpu.memory_space<vmem>>, vector<32x64xf32>
    %cst_56 = arith.constant dense<0.000000e+00> : vector<48x64xf32>
    %57 = tpu.matmul %55, %56, %cst_56 {dimension_numbers = #tpu.dot_dimension_numbers<[1], [0], [0], [1], [0, 0, 1, 1], [], []>} : vector<48x32xf32>, vector<32x64xf32>, vector<48x64xf32> -> vector<48x64xf32>
    %58 = arith.addf %54, %57 : vector<48x64xf32>
    %c0_57 = arith.constant 0 : index
    %c0_58 = arith.constant 0 : index
    %59 = vector.load %arg5[%c0_57, %c0_58] : memref<1x64xf32, #tpu.memory_space<vmem>>, vector<1x64xf32>
    %60 = vector.broadcast %59 : vector<1x64xf32> to vector<48x64xf32>
    %61 = arith.addf %58, %60 : vector<48x64xf32>
    %cst_59 = arith.constant 0.000000e+00 : f32
    %62 = vector.broadcast %cst_59 : f32 to vector<48x64xf32>
    %63 = arith.maximumf %61, %62 : vector<48x64xf32>
    %c0_60 = arith.constant 0 : index
    %c0_61 = arith.constant 0 : index
    %64 = vector.load %arg9[%c0_60, %c0_61] : memref<48x64xf32, #tpu.memory_space<vmem>>, vector<48x64xf32>
    tpu.vector_store %arg9[%c0_60, %c0_61], %63 {strides = array<i32>} : memref<48x64xf32, #tpu.memory_space<vmem>>, vector<48x64xf32>,
    %c0_62 = arith.constant 0 : index
    %c0_63 = arith.constant 0 : index
    %65 = tpu.strided_load %arg9[%c0_62, %c0_63] {strides = array<i32: 3, 1>} : memref<48x64xf32, #tpu.memory_space<vmem>>, vector<16x64xf32>
    %c1_64 = arith.constant 1 : index
    %c0_65 = arith.constant 0 : index
    %66 = tpu.strided_load %arg9[%c1_64, %c0_65] {strides = array<i32: 3, 1>} : memref<48x64xf32, #tpu.memory_space<vmem>>, vector<16x64xf32>
    %67 = arith.maximumf %65, %66 : vector<16x64xf32>
    %c2_66 = arith.constant 2 : index
    %c0_67 = arith.constant 0 : index
    %68 = tpu.strided_load %arg9[%c2_66, %c0_67] {strides = array<i32: 3, 1>} : memref<48x64xf32, #tpu.memory_space<vmem>>, vector<16x64xf32>
    %69 = arith.maximumf %67, %68 : vector<16x64xf32>
    %c0_68 = arith.constant 0 : index
    %c0_69 = arith.constant 0 : index
    %c0_70 = arith.constant 0 : index
    %70 = vector.load %arg6[%c0_68, %c0_69, %c0_70] : memref<1x16x64xf32, #tpu.memory_space<vmem>>, vector<1x16x64xf32>
    %71 = vector.shape_cast %70 : vector<1x16x64xf32> to vector<16x64xf32>
    %72 = vector.shape_cast %69 : vector<16x64xf32> to vector<1x16x64xf32>
    tpu.vector_store %arg6[%c0_68, %c0_69, %c0_70], %72 {strides = array<i32>} : memref<1x16x64xf32, #tpu.memory_space<vmem>>, vector<1x16x64xf32>,
    return
  }
  func.func @transform_0(%arg0: i32) -> (i32, i32, i32) {
    %c0_i32 = arith.constant 0 : i32
    %c0_i32_0 = arith.constant 0 : i32
    %c0_i32_1 = arith.constant 0 : i32
    return %arg0, %c0_i32, %c0_i32_0 : i32, i32, i32
  }
  func.func @transform_1(%arg0: i32) -> (i32, i32) {
    %c0_i32 = arith.constant 0 : i32
    %c0_i32_0 = arith.constant 0 : i32
    %c0_i32_1 = arith.constant 0 : i32
    return %c0_i32, %c0_i32_0 : i32, i32
  }
  func.func @transform_2(%arg0: i32) -> (i32, i32) {
    %c0_i32 = arith.constant 0 : i32
    %c0_i32_0 = arith.constant 0 : i32
    %c0_i32_1 = arith.constant 0 : i32
    return %c0_i32, %c0_i32_0 : i32, i32
  }
  func.func @transform_3(%arg0: i32) -> (i32, i32) {
    %c0_i32 = arith.constant 0 : i32
    %c0_i32_0 = arith.constant 0 : i32
    %c0_i32_1 = arith.constant 0 : i32
    return %c0_i32, %c0_i32_0 : i32, i32
  }
  func.func @transform_4(%arg0: i32) -> (i32, i32) {
    %c0_i32 = arith.constant 0 : i32
    %c0_i32_0 = arith.constant 0 : i32
    %c0_i32_1 = arith.constant 0 : i32
    return %c0_i32, %c0_i32_0 : i32, i32
  }
  func.func @transform_5(%arg0: i32) -> (i32, i32, i32) {
    %c0_i32 = arith.constant 0 : i32
    %c0_i32_0 = arith.constant 0 : i32
    %c0_i32_1 = arith.constant 0 : i32
    return %arg0, %c0_i32, %c0_i32_0 : i32, i32, i32
  }
}

module attributes {stable_mosaic.version = 11 : i64} {
  func.func @_fcn_kernel(%arg0: i32, %arg1: memref<2x1024xf32, #tpu.memory_space<vmem>>, %arg2: memref<1024x32xf32, #tpu.memory_space<vmem>>, %arg3: memref<1x32xf32, #tpu.memory_space<vmem>>, %arg4: memref<32x2xf32, #tpu.memory_space<vmem>>, %arg5: memref<1x2xf32, #tpu.memory_space<vmem>>, %arg6: memref<2x2xf32, #tpu.memory_space<vmem>>) attributes {dimension_semantics = [#tpu.dimension_semantics<arbitrary>], iteration_bounds = array<i64: 1>, scalar_prefetch = 0 : i64, scratch_operands = 0 : i64, tpu.core_type = #tpu.core_type<tc>, window_params = [{pipeline_mode = #tpu.pipeline_mode<synchronous>, transform_indices = @transform_0, window_bounds = array<i64: 2, 1024>}, {pipeline_mode = #tpu.pipeline_mode<synchronous>, transform_indices = @transform_1, window_bounds = array<i64: 1024, 32>}, {pipeline_mode = #tpu.pipeline_mode<synchronous>, transform_indices = @transform_2, window_bounds = array<i64: 1, 32>}, {pipeline_mode = #tpu.pipeline_mode<synchronous>, transform_indices = @transform_3, window_bounds = array<i64: 32, 2>}, {pipeline_mode = #tpu.pipeline_mode<synchronous>, transform_indices = @transform_4, window_bounds = array<i64: 1, 2>}, {pipeline_mode = #tpu.pipeline_mode<synchronous>, transform_indices = @transform_5, window_bounds = array<i64: 2, 2>}]} {
    %c0 = arith.constant 0 : index
    %c0_0 = arith.constant 0 : index
    %0 = vector.load %arg1[%c0, %c0_0] : memref<2x1024xf32, #tpu.memory_space<vmem>>, vector<2x1024xf32>
    %c0_1 = arith.constant 0 : index
    %c0_2 = arith.constant 0 : index
    %1 = vector.load %arg2[%c0_1, %c0_2] : memref<1024x32xf32, #tpu.memory_space<vmem>>, vector<1024x32xf32>
    %cst = arith.constant dense<0.000000e+00> : vector<2x32xf32>
    %2 = tpu.matmul %0, %1, %cst {dimension_numbers = #tpu.dot_dimension_numbers<[1], [0], [0], [1], [0, 0, 1, 1], [], []>} : vector<2x1024xf32>, vector<1024x32xf32>, vector<2x32xf32> -> vector<2x32xf32>
    %c0_3 = arith.constant 0 : index
    %c0_4 = arith.constant 0 : index
    %3 = vector.load %arg3[%c0_3, %c0_4] : memref<1x32xf32, #tpu.memory_space<vmem>>, vector<1x32xf32>
    %4 = vector.broadcast %3 : vector<1x32xf32> to vector<2x32xf32>
    %5 = arith.addf %2, %4 : vector<2x32xf32>
    %cst_5 = arith.constant 0.000000e+00 : f32
    %6 = vector.broadcast %cst_5 : f32 to vector<2x32xf32>
    %7 = arith.maximumf %5, %6 : vector<2x32xf32>
    %c0_6 = arith.constant 0 : index
    %c0_7 = arith.constant 0 : index
    %8 = vector.load %arg4[%c0_6, %c0_7] : memref<32x2xf32, #tpu.memory_space<vmem>>, vector<32x2xf32>
    %cst_8 = arith.constant dense<0.000000e+00> : vector<2x2xf32>
    %9 = tpu.matmul %7, %8, %cst_8 {dimension_numbers = #tpu.dot_dimension_numbers<[1], [0], [0], [1], [0, 0, 1, 1], [], []>} : vector<2x32xf32>, vector<32x2xf32>, vector<2x2xf32> -> vector<2x2xf32>
    %c0_9 = arith.constant 0 : index
    %c0_10 = arith.constant 0 : index
    %10 = vector.load %arg5[%c0_9, %c0_10] : memref<1x2xf32, #tpu.memory_space<vmem>>, vector<1x2xf32>
    %11 = vector.broadcast %10 : vector<1x2xf32> to vector<2x2xf32>
    %12 = arith.addf %9, %11 : vector<2x2xf32>
    %c0_11 = arith.constant 0 : index
    %c0_12 = arith.constant 0 : index
    %13 = vector.load %arg6[%c0_11, %c0_12] : memref<2x2xf32, #tpu.memory_space<vmem>>, vector<2x2xf32>
    tpu.vector_store %arg6[%c0_11, %c0_12], %12 {strides = array<i32>} : memref<2x2xf32, #tpu.memory_space<vmem>>, vector<2x2xf32>,
    return
  }
  func.func @transform_0(%arg0: i32) -> (i32, i32) {
    %c0_i32 = arith.constant 0 : i32
    %c0_i32_0 = arith.constant 0 : i32
    %c0_i32_1 = arith.constant 0 : i32
    return %c0_i32, %c0_i32_0 : i32, i32
  }
  func.func @transform_1(%arg0: i32) -> (i32, i32) {
    %c0_i32 = arith.constant 0 : i32
    %c0_i32_0 = arith.constant 0 : i32
    %c0_i32_1 = arith.constant 0 : i32
    return %c0_i32, %c0_i32_0 : i32, i32
  }
  func.func @transform_2(%arg0: i32) -> (i32, i32) {
    %c0_i32 = arith.constant 0 : i32
    %c0_i32_0 = arith.constant 0 : i32
    %c0_i32_1 = arith.constant 0 : i32
    return %c0_i32, %c0_i32_0 : i32, i32
  }
  func.func @transform_3(%arg0: i32) -> (i32, i32) {
    %c0_i32 = arith.constant 0 : i32
    %c0_i32_0 = arith.constant 0 : i32
    %c0_i32_1 = arith.constant 0 : i32
    return %c0_i32, %c0_i32_0 : i32, i32
  }
  func.func @transform_4(%arg0: i32) -> (i32, i32) {
    %c0_i32 = arith.constant 0 : i32
    %c0_i32_0 = arith.constant 0 : i32
    %c0_i32_1 = arith.constant 0 : i32
    return %c0_i32, %c0_i32_0 : i32, i32
  }
  func.func @transform_5(%arg0: i32) -> (i32, i32) {
    %c0_i32 = arith.constant 0 : i32
    %c0_i32_0 = arith.constant 0 : i32
    %c0_i32_1 = arith.constant 0 : i32
    return %c0_i32, %c0_i32_0 : i32, i32
  }
}

</mosaic_0001>

<bundles_post_ra>
// kernel: _lambda_.3
= control target key start
LH: loop header
LB: loop body
LE: loop exit
PB: predicated region body
PF: predicated region fallthrough
CT: control target
= control target key end

     0   :  { %s859_s0 = inlined_call_operand.vmem [shape: f32[2,1024], index: 0, kind: input, shape index: {}]   ;;  %s860_s1 = inlined_call_operand.vmem [shape: f32[1024,32], index: 1, kind: input, shape index: {}]   ;;  %s861_s2 = inlined_call_operand.vmem [shape: f32[1,32], index: 2, kind: input, shape index: {}]   ;;  %s862_s3 = inlined_call_operand.vmem [shape: f32[32,2], index: 3, kind: input, shape index: {}]   ;;  %s863_s4 = inlined_call_operand.vmem [shape: f32[1,2], index: 4, kind: input, shape index: {}]   ;;  %s864_s5 = inlined_call_operand.hbm [shape: f32[2,2], index: 5, kind: output, shape index: {}]  }
   0x1   :  { %v70_v0 = vld [vmem:[%s860_s1 + $0x178] sm:$0xff]  ;;  %v69_v2 = vld [vmem:[%s860_s1 + $0x170] sm:$0xff]  ;;  %v68_v6 = vld [vmem:[%s860_s1 + $0x168] sm:$0xff] }
   0x2   :  { %v38_v1 = vld [vmem:[%s860_s1 + $0x78] sm:$0xff]  ;;  %216 = vmatpush.msra.mxu2 %v70_v0  ;;  %v37_v4 = vld [vmem:[%s860_s1 + $0x70] sm:$0xff]  ;;  %v36_v8 = vld [vmem:[%s860_s1 + $0x68] sm:$0xff] }
   0x3   :  { %176 = vmatpush.msra.mxu0 %v38_v1  ;;  %v86_v3 = vld [vmem:[%s860_s1 + $0x1f8] sm:$0xff]  ;;  %v85_v7 = vld [vmem:[%s860_s1 + $0x1f0] sm:$0xff]  ;;  %v84_v10 = vld [vmem:[%s860_s1 + $0x1e8] sm:$0xff] }
   0x4   :  { %v54_v5 = vld [vmem:[%s860_s1 + $0xf8] sm:$0xff]  ;;  %236 = vmatpush.msra.mxu3 %v86_v3  ;;  %217 = vmatpush.msra.mxu2 %v69_v2  ;;  %v53_v9 = vld [vmem:[%s860_s1 + $0xf0] sm:$0xff]  ;;  %v67_v11 = vld [vmem:[%s860_s1 + $0x160] sm:$0xff] }
   0x5   :  { %196 = vmatpush.msra.mxu1 %v54_v5  ;;  %177 = vmatpush.msra.mxu0 %v37_v4  ;;  %v35_v12 = vld [vmem:[%s860_s1 + $0x60] sm:$0xff]  ;;  %v52_v13 = vld [vmem:[%s860_s1 + $0xe8] sm:$0xff]  ;;  %v66_v16 = vld [vmem:[%s860_s1 + $0x158] sm:$0xff] }
   0x6   :  { %237 = vmatpush.msra.mxu3 %v85_v7  ;;  %218 = vmatpush.msra.mxu2 %v68_v6  ;;  %v83_v14 = vld [vmem:[%s860_s1 + $0x1e0] sm:$0xff]  ;;  %v34_v17 = vld [vmem:[%s860_s1 + $0x58] sm:$0xff]  ;;  %v65_v20 = vld [vmem:[%s860_s1 + $0x150] sm:$0xff] }
   0x7   :  { %197 = vmatpush.msra.mxu1 %v53_v9  ;;  %178 = vmatpush.msra.mxu0 %v36_v8  ;;  %v51_v15 = vld [vmem:[%s860_s1 + $0xe0] sm:$0xff]  ;;  %v82_v18 = vld [vmem:[%s860_s1 + $0x1d8] sm:$0xff]  ;;  %v33_v21 = vld [vmem:[%s860_s1 + $0x50] sm:$0xff] }
   0x8   :  { %238 = vmatpush.msra.mxu3 %v84_v10  ;;  %219 = vmatpush.msra.mxu2 %v67_v11  ;;  %v50_v19 = vld [vmem:[%s860_s1 + $0xd8] sm:$0xff]  ;;  %v81_v22 = vld [vmem:[%s860_s1 + $0x1d0] sm:$0xff]  ;;  %v64_v24 = vld [vmem:[%s860_s1 + $0x148] sm:$0xff] }
   0x9   :  { %198 = vmatpush.msra.mxu1 %v52_v13  ;;  %179 = vmatpush.msra.mxu0 %v35_v12  ;;  %v49_v23 = vld [vmem:[%s860_s1 + $0xd0] sm:$0xff]  ;;  %v32_v25 = vld [vmem:[%s860_s1 + $0x48] sm:$0xff]  ;;  %v63_v28 = vld [vmem:[%s860_s1 + $0x140] sm:$0xff] }
   0xa   :  { %239 = vmatpush.msra.mxu3 %v83_v14  ;;  %220 = vmatpush.msra.mxu2 %v66_v16  ;;  %v80_v26 = vld [vmem:[%s860_s1 + $0x1c8] sm:$0xff]  ;;  %v31_v29 = vld [vmem:[%s860_s1 + $0x40] sm:$0xff]  ;;  %v62_v32 = vld [vmem:[%s860_s1 + $0x138] sm:$0xff] }
   0xb   :  { %199 = vmatpush.msra.mxu1 %v51_v15  ;;  %180 = vmatpush.msra.mxu0 %v34_v17  ;;  %v48_v27 = vld [vmem:[%s860_s1 + $0xc8] sm:$0xff]  ;;  %v79_v30 = vld [vmem:[%s860_s1 + $0x1c0] sm:$0xff]  ;;  %v30_v33 = vld [vmem:[%s860_s1 + $0x38] sm:$0xff] }
   0xc   :  { %240 = vmatpush.msra.mxu3 %v82_v18  ;;  %221 = vmatpush.msra.mxu2 %v65_v20  ;;  %v47_v31 = vld [vmem:[%s860_s1 + $0xc0] sm:$0xff]  ;;  %v78_v34 = vld [vmem:[%s860_s1 + $0x1b8] sm:$0xff]  ;;  %v61_v36 = vld [vmem:[%s860_s1 + $0x130] sm:$0xff] }
   0xd   :  { %200 = vmatpush.msra.mxu1 %v50_v19  ;;  %181 = vmatpush.msra.mxu0 %v33_v21  ;;  %v46_v35 = vld [vmem:[%s860_s1 + $0xb8] sm:$0xff]  ;;  %v29_v37 = vld [vmem:[%s860_s1 + $0x30] sm:$0xff]  ;;  %v60_v40 = vld [vmem:[%s860_s1 + $0x128] sm:$0xff] }
   0xe   :  { %241 = vmatpush.msra.mxu3 %v81_v22  ;;  %222 = vmatpush.msra.mxu2 %v64_v24  ;;  %v77_v38 = vld [vmem:[%s860_s1 + $0x1b0] sm:$0xff]  ;;  %v28_v41 = vld [vmem:[%s860_s1 + $0x28] sm:$0xff]  ;;  %v59_v44 = vld [vmem:[%s860_s1 + $0x120] sm:$0xff] }
   0xf   :  { %201 = vmatpush.msra.mxu1 %v49_v23  ;;  %182 = vmatpush.msra.mxu0 %v32_v25  ;;  %v45_v39 = vld [vmem:[%s860_s1 + $0xb0] sm:$0xff]  ;;  %v76_v42 = vld [vmem:[%s860_s1 + $0x1a8] sm:$0xff]  ;;  %v27_v45 = vld [vmem:[%s860_s1 + $0x20] sm:$0xff] }
  0x10   :  { %242 = vmatpush.msra.mxu3 %v80_v26  ;;  %223 = vmatpush.msra.mxu2 %v63_v28  ;;  %v44_v43 = vld [vmem:[%s860_s1 + $0xa8] sm:$0xff]  ;;  %v75_v46 = vld [vmem:[%s860_s1 + $0x1a0] sm:$0xff]  ;;  %v58_v48 = vld [vmem:[%s860_s1 + $0x118] sm:$0xff] }
  0x11   :  { %202 = vmatpush.msra.mxu1 %v48_v27  ;;  %183 = vmatpush.msra.mxu0 %v31_v29  ;;  %v43_v47 = vld [vmem:[%s860_s1 + $0xa0] sm:$0xff]  ;;  %v26_v49 = vld [vmem:[%s860_s1 + $0x18] sm:$0xff]  ;;  %v57_v52 = vld [vmem:[%s860_s1 + $0x110] sm:$0xff] }
  0x12   :  { %243 = vmatpush.msra.mxu3 %v79_v30  ;;  %224 = vmatpush.msra.mxu2 %v62_v32  ;;  %v74_v50 = vld [vmem:[%s860_s1 + $0x198] sm:$0xff]  ;;  %v25_v53 = vld [vmem:[%s860_s1 + $0x10] sm:$0xff]  ;;  %v56_v56 = vld [vmem:[%s860_s1 + $0x108] sm:$0xff] }
  0x13   :  { %203 = vmatpush.msra.mxu1 %v47_v31  ;;  %184 = vmatpush.msra.mxu0 %v30_v33  ;;  %v42_v51 = vld [vmem:[%s860_s1 + $0x98] sm:$0xff]  ;;  %v73_v54 = vld [vmem:[%s860_s1 + $0x190] sm:$0xff]  ;;  %v24_v57 = vld [vmem:[%s860_s1 + $0x8] sm:$0xff] }
  0x14   :  { %244 = vmatpush.msra.mxu3 %v78_v34  ;;  %225 = vmatpush.msra.mxu2 %v61_v36  ;;  %v41_v55 = vld [vmem:[%s860_s1 + $0x90] sm:$0xff]  ;;  %v72_v58 = vld [vmem:[%s860_s1 + $0x188] sm:$0xff]  ;;  %v55_v60 = vld [vmem:[%s860_s1 + $0x100] sm:$0xff] }
  0x15   :  { %204 = vmatpush.msra.mxu1 %v46_v35  ;;  %185 = vmatpush.msra.mxu0 %v29_v37  ;;  %v40_v59 = vld [vmem:[%s860_s1 + $0x88] sm:$0xff]  ;;  %v23_v61 = vld [vmem:[%s860_s1] sm:$0xff]  ;;  %v134_v62 = vld [vmem:[%s860_s1 + $0x378] sm:$0xff] }
  0x16   :  { %245 = vmatpush.msra.mxu3 %v77_v38  ;;  %226 = vmatpush.msra.mxu2 %v60_v40  ;;  %v71_v63 = vld [vmem:[%s860_s1 + $0x180] sm:$0xff]  ;;  %v102_v0 = vld [vmem:[%s860_s1 + $0x278] sm:$0xff]  ;;  %v133_v2 = vld [vmem:[%s860_s1 + $0x370] sm:$0xff] }
  0x17   :  { %205 = vmatpush.msra.mxu1 %v45_v39  ;;  %186 = vmatpush.msra.mxu0 %v28_v41  ;;  %v150_v1 = vld [vmem:[%s860_s1 + $0x3f8] sm:$0xff]  ;;  %v39_v3 = vld [vmem:[%s860_s1 + $0x80] sm:$0xff]  ;;  %v101_v4 = vld [vmem:[%s860_s1 + $0x270] sm:$0xff] }
  0x18   :  { %246 = vmatpush.msra.mxu3 %v76_v42  ;;  %227 = vmatpush.msra.mxu2 %v59_v44  ;;  %v118_v5 = vld [vmem:[%s860_s1 + $0x2f8] sm:$0xff]  ;;  %v132_v6 = vld [vmem:[%s860_s1 + $0x368] sm:$0xff]  ;;  %v149_v7 = vld [vmem:[%s860_s1 + $0x3f0] sm:$0xff] }
  0x19   :  { %206 = vmatpush.msra.mxu1 %v44_v43  ;;  %187 = vmatpush.msra.mxu0 %v27_v45  ;;  %v100_v8 = vld [vmem:[%s860_s1 + $0x268] sm:$0xff]  ;;  %v117_v9 = vld [vmem:[%s860_s1 + $0x2f0] sm:$0xff]  ;;  %v131_v10 = vld [vmem:[%s860_s1 + $0x360] sm:$0xff] }
  0x1a   :  { %247 = vmatpush.msra.mxu3 %v75_v46  ;;  %228 = vmatpush.msra.mxu2 %v58_v48  ;;  %v148_v11 = vld [vmem:[%s860_s1 + $0x3e8] sm:$0xff]  ;;  %v99_v12 = vld [vmem:[%s860_s1 + $0x260] sm:$0xff]  ;;  %v130_v15 = vld [vmem:[%s860_s1 + $0x358] sm:$0xff] }
  0x1b   :  { %207 = vmatpush.msra.mxu1 %v43_v47  ;;  %188 = vmatpush.msra.mxu0 %v26_v49  ;;  %v116_v13 = vld [vmem:[%s860_s1 + $0x2e8] sm:$0xff]  ;;  %v21_v14 = vld [vmem:[%s859_s0] sm:$0xff]  ;;  %v98_v17 = vld [vmem:[%s860_s1 + $0x258] sm:$0xff] }
  0x1c   :  { %248 = vmatpush.msra.mxu3 %v74_v50  ;;  %229 = vmatpush.msra.mxu2 %v57_v52  ;;  %v147_v16 = vld [vmem:[%s860_s1 + $0x3e0] sm:$0xff]  ;;  %157 = vst [vmem:[#allocation1] ss:$4 sm:$0xff] %v21_v14  ;;  %v129_v19 = vld [vmem:[%s860_s1 + $0x350] sm:$0xff]  ;;  %v146_v20 = vld [vmem:[%s860_s1 + $0x3d8] sm:$0xff] }
  0x1d   :  { %208 = vmatpush.msra.mxu1 %v42_v51  ;;  %189 = vmatpush.msra.mxu0 %v25_v53  ;;  %v115_v18 = vld [vmem:[%s860_s1 + $0x2e0] sm:$0xff]  ;;  %v97_v21 = vld [vmem:[%s860_s1 + $0x250] sm:$0xff]  ;;  %v114_v22 = vld [vmem:[%s860_s1 + $0x2d8] sm:$0xff] }
  0x1e   :  { %249 = vmatpush.msra.mxu3 %v73_v54  ;;  %230 = vmatpush.msra.mxu2 %v56_v56  ;;  %v128_v23 = vld [vmem:[%s860_s1 + $0x348] sm:$0xff]  ;;  %v145_v24 = vld [vmem:[%s860_s1 + $0x3d0] sm:$0xff]  ;;  %v127_v28 = vld [vmem:[%s860_s1 + $0x340] sm:$0xff] }
  0x1f   :  { %209 = vmatpush.msra.mxu1 %v41_v55  ;;  %190 = vmatpush.msra.mxu0 %v24_v57  ;;  %v22_v25 = vld [vmem:[%s859_s0 + $0x8] sm:$0xff]  ;;  %v113_v27 = vld [vmem:[%s860_s1 + $0x2d0] sm:$0xff]  ;;  %v95_v30 = vld [vmem:[%s860_s1 + $0x240] sm:$0xff] }
  0x20   :  { %250 = vmatpush.msra.mxu3 %v72_v58  ;;  %231 = vmatpush.msra.mxu2 %v55_v60  ;;  %v96_v26 = vld [vmem:[%s860_s1 + $0x248] sm:$0xff]  ;;  %159 = vst [vmem:[#allocation1 + $0x20] ss:$4 sm:$0xff] %v22_v25  ;;  %v126_v32 = vld [vmem:[%s860_s1 + $0x338] sm:$0xff]  ;;  %v143_v33 = vld [vmem:[%s860_s1 + $0x3c0] sm:$0xff] }
  0x21   :  { %210 = vmatpush.msra.mxu1 %v40_v59  ;;  %191 = vmatpush.msra.mxu0 %v23_v61  ;;  %v144_v29 = vld [vmem:[%s860_s1 + $0x3c8] sm:$0xff]  ;;  %v94_v34 = vld [vmem:[%s860_s1 + $0x238] sm:$0xff]  ;;  %v111_v35 = vld [vmem:[%s860_s1 + $0x2c0] sm:$0xff] }
  0x22   :  { %296 = vmatpush.msrb.mxu2 %v134_v62  ;;  %251 = vmatpush.msra.mxu3 %v71_v63  ;;  %v112_v31 = vld [vmem:[%s860_s1 + $0x2c8] sm:$0xff] }
  0x23   :  { %256 = vmatpush.msrb.mxu0 %v102_v0  ;;  %211 = vmatpush.msra.mxu1 %v39_v3 }
  0x24   :  { %316 = vmatpush.msrb.mxu3 %v150_v1  ;;  %297 = vmatpush.msrb.mxu2 %v133_v2 }
  0x25   :  { %257 = vmatpush.msrb.mxu0 %v101_v4  ;;  %276 = vmatpush.msrb.mxu1 %v118_v5 }
  0x26   :  { %298 = vmatpush.msrb.mxu2 %v132_v6  ;;  %317 = vmatpush.msrb.mxu3 %v149_v7 }
  0x27   :  { %258 = vmatpush.msrb.mxu0 %v100_v8  ;;  %277 = vmatpush.msrb.mxu1 %v117_v9 }
  0x28   :  { %299 = vmatpush.msrb.mxu2 %v131_v10  ;;  %318 = vmatpush.msrb.mxu3 %v148_v11 }
  0x29   :  { %259 = vmatpush.msrb.mxu0 %v99_v12  ;;  %278 = vmatpush.msrb.mxu1 %v116_v13 }
  0x2a   :  { %300 = vmatpush.msrb.mxu2 %v130_v15  ;;  %319 = vmatpush.msrb.mxu3 %v147_v16 }
  0x2b   :  { %260 = vmatpush.msrb.mxu0 %v98_v17  ;;  %279 = vmatpush.msrb.mxu1 %v115_v18 }
  0x2c   :  { %301 = vmatpush.msrb.mxu2 %v129_v19  ;;  %320 = vmatpush.msrb.mxu3 %v146_v20 }
  0x2d   :  { %261 = vmatpush.msrb.mxu0 %v97_v21  ;;  %280 = vmatpush.msrb.mxu1 %v114_v22 }
  0x2e   :  { %302 = vmatpush.msrb.mxu2 %v128_v23  ;;  %321 = vmatpush.msrb.mxu3 %v145_v24 }
  0x2f   :  { %262 = vmatpush.msrb.mxu0 %v96_v26  ;;  %281 = vmatpush.msrb.mxu1 %v113_v27 }
  0x30   :  { %303 = vmatpush.msrb.mxu2 %v127_v28  ;;  %322 = vmatpush.msrb.mxu3 %v144_v29 }
  0x31   :  { %10 = vsyncpa [#allocation3], 0  ;;  %263 = vmatpush.msrb.mxu0 %v95_v30  ;;  %282 = vmatpush.msrb.mxu1 %v112_v31  ;;  %v125_v36 = vld [vmem:[%s860_s1 + $0x330] sm:$0xff]  ;;  %v142_v37 = vld [vmem:[%s860_s1 + $0x3b8] sm:$0xff]  ;;  %vm345_vm0 = vcmask 261120   ;;  %s417_s8 = smov [#allocation2]  }
  0x32   :  { %304 = vmatpush.msrb.mxu2 %v126_v32  ;;  %323 = vmatpush.msrb.mxu3 %v143_v33  ;;  %v93_v38 = vld [vmem:[%s860_s1 + $0x230] sm:$0xff]  ;;  %v110_v39 = vld [vmem:[%s860_s1 + $0x2b8] sm:$0xff]  ;;  %v124_v40 = vld [vmem:[%s860_s1 + $0x328] sm:$0xff]  ;;  %s376_s9 = sshll.u32 %s417_s8, 4  ;;  %s378_s12 = sshll.u32 %s864_s5, 4  ;;  %vm369_vm1 = vcmask 9216   ;;  %s377_s9 = int_to_ptr.vmem [resolvable:$true] %s376_s9  ;;  %s379_s12 = int_to_ptr.hbm [resolvable:$true] %s378_s12 }
  0x33   :  { %264 = vmatpush.msrb.mxu0 %v94_v34  ;;  %283 = vmatpush.msrb.mxu1 %v111_v35  ;;  %v141_v41 = vld [vmem:[%s860_s1 + $0x3b0] sm:$0xff]  ;;  %v92_v42 = vld [vmem:[%s860_s1 + $0x228] sm:$0xff]  ;;  %v123_v44 = vld [vmem:[%s860_s1 + $0x320] sm:$0xff] }
  0x34   :  { %305 = vmatpush.msrb.mxu2 %v125_v36  ;;  %324 = vmatpush.msrb.mxu3 %v142_v37  ;;  %v109_v43 = vld [vmem:[%s860_s1 + $0x2b0] sm:$0xff]  ;;  %v140_v45 = vld [vmem:[%s860_s1 + $0x3a8] sm:$0xff]  ;;  %v91_v47 = vld [vmem:[%s860_s1 + $0x220] sm:$0xff] }
  0x35   :  { %265 = vmatpush.msrb.mxu0 %v93_v38  ;;  %284 = vmatpush.msrb.mxu1 %v110_v39  ;;  %v162_v46 = vld.sshfl [vmem:[#allocation1 + $0x10] sm:$0xff pattern:$0x73625140]  ;;  %v108_v48 = vld [vmem:[%s860_s1 + $0x2a8] sm:$0xff]  ;;  %v122_v49 = vld [vmem:[%s860_s1 + $0x318] sm:$0xff] }
  0x36   :  { %306 = vmatpush.msrb.mxu2 %v124_v40  ;;  %325 = vmatpush.msrb.mxu3 %v141_v41  ;;  %v139_v50 = vld [vmem:[%s860_s1 + $0x3a0] sm:$0xff]  ;;  %v163_v52 = vld.sshfl [vmem:[#allocation1 + $0x18] sm:$0xff pattern:$0x73625140]  ;;  %v121_v55 = vld [vmem:[%s860_s1 + $0x310] sm:$0xff] }
  0x37   :  { %266 = vmatpush.msrb.mxu0 %v92_v42  ;;  %285 = vmatpush.msrb.mxu1 %v109_v43  ;;  %v160_v51 = vld.sshfl [vmem:[#allocation1] sm:$0xff pattern:$0x73625140]  ;;  %v90_v53 = vld [vmem:[%s860_s1 + $0x218] sm:$0xff]  ;;  %v89_v58 = vld [vmem:[%s860_s1 + $0x210] sm:$0xff] }
  0x38   :  { %307 = vmatpush.msrb.mxu2 %v123_v44  ;;  %326 = vmatpush.msrb.mxu3 %v140_v45  ;;  %v107_v54 = vld [vmem:[%s860_s1 + $0x2a0] sm:$0xff]  ;;  %v138_v56 = vld [vmem:[%s860_s1 + $0x398] sm:$0xff]  ;;  %v161_v57 = vld.sshfl [vmem:[#allocation1 + $0x8] sm:$0xff pattern:$0x73625140] }
  0x39   :  { %232 = vmatmul.f32.vlgmr.msra.gmra.mxu2 %v162_v46  ;;  %267 = vmatpush.msrb.mxu0 %v91_v47  ;;  %v106_v59 = vld [vmem:[%s860_s1 + $0x298] sm:$0xff]  ;;  %v120_v60 = vld [vmem:[%s860_s1 + $0x308] sm:$0xff]  ;;  %v137_v61 = vld [vmem:[%s860_s1 + $0x390] sm:$0xff] }
  0x3a   :  { %286 = vmatpush.msrb.mxu1 %v108_v48  ;;  %308 = vmatpush.msrb.mxu2 %v122_v49  ;;  %v88_v62 = vld [vmem:[%s860_s1 + $0x208] sm:$0xff]  ;;  %v105_v63 = vld [vmem:[%s860_s1 + $0x290] sm:$0xff]  ;;  %v119_v0 = vld [vmem:[%s860_s1 + $0x300] sm:$0xff] }
  0x3b   :  { %327 = vmatpush.msrb.mxu3 %v139_v50  ;;  %192 = vmatmul.f32.vlgmr.msra.gmra.mxu0 %v160_v51  ;;  %v136_v1 = vld [vmem:[%s860_s1 + $0x388] sm:$0xff]  ;;  %v166_v2 = vld.sshfl [vmem:[#allocation1 + $0x30] sm:$0xff pattern:$0x73625140]  ;;  %v87_v3 = vld [vmem:[%s860_s1 + $0x200] sm:$0xff] }
  0x3c   :  { %252 = vmatmul.f32.vlgmr.msra.gmra.mxu3 %v163_v52  ;;  %268 = vmatpush.msrb.mxu0 %v90_v53  ;;  %v104_v4 = vld [vmem:[%s860_s1 + $0x288] sm:$0xff]  ;;  %v135_v5 = vld [vmem:[%s860_s1 + $0x380] sm:$0xff]  ;;  %v167_v7 = vld.sshfl [vmem:[#allocation1 + $0x38] sm:$0xff pattern:$0x73625140] }
  0x3d   :  { %287 = vmatpush.msrb.mxu1 %v107_v54  ;;  %309 = vmatpush.msrb.mxu2 %v121_v55  ;;  %v164_v6 = vld.sshfl [vmem:[#allocation1 + $0x20] sm:$0xff pattern:$0x73625140]  ;;  %v165_v9 = vld.sshfl [vmem:[#allocation1 + $0x28] sm:$0xff pattern:$0x73625140] }
  0x3e   :  { %328 = vmatpush.msrb.mxu3 %v138_v56  ;;  %212 = vmatmul.f32.vlgmr.msra.gmra.mxu1 %v161_v57  ;;  %v103_v8 = vld [vmem:[%s860_s1 + $0x280] sm:$0xff]  ;;  %v340_v10 = vld [vmem:[%s862_s3 + $0x18] sm:$0xff]  ;;  %v339_v11 = vld [vmem:[%s862_s3 + $0x10] sm:$0xff] }
  0x3f   :  { %269 = vmatpush.msrb.mxu0 %v89_v58  ;;  %288 = vmatpush.msrb.mxu1 %v106_v59  ;;  %v338_v12 = vld [vmem:[%s862_s3 + $0x8] sm:$0xff]  ;;  %v337_v13 = vld [vmem:[%s862_s3] sm:$0xff] }
  0x40   :  { %310 = vmatpush.msrb.mxu2 %v120_v60  ;;  %329 = vmatpush.msrb.mxu3 %v137_v61  ;;  %v389_v14 = vld [vmem:[%s861_s2] ss:$0 sm:$0xff] }
  0x41   :  { %270 = vmatpush.msrb.mxu0 %v88_v62  ;;  %289 = vmatpush.msrb.mxu1 %v105_v63  ;;  %v390_v32 = vld [vmem:[%s863_s4] ss:$0 sm:$0xff] }
  0x42   :  { %311 = vmatpush.msrb.mxu2 %v119_v0  ;;  %330 = vmatpush.msrb.mxu3 %v136_v1 }
  0x43   :  { %312 = vmatmul.f32.vlgmr.msrb.gmra.mxu2 %v166_v2  ;;  %271 = vmatpush.msrb.mxu0 %v87_v3 }
  0x44   :  { %290 = vmatpush.msrb.mxu1 %v104_v4  ;;  %331 = vmatpush.msrb.mxu3 %v135_v5 }
  0x45   :  { %272 = vmatmul.f32.vlgmr.msrb.gmra.mxu0 %v164_v6  ;;  %332 = vmatmul.f32.vlgmr.msrb.gmra.mxu3 %v167_v7 }
  0x46   :  { %291 = vmatpush.msrb.mxu1 %v103_v8  ;;  %361 = vmatpush.msra.mxu0 %v340_v10 }
  0x47   :  { %292 = vmatmul.f32.vlgmr.msrb.gmra.mxu1 %v165_v9 }
  0x48   :  { %362 = vmatpush.msra.mxu0 %v339_v11 }
  0x4a   :  { %363 = vmatpush.msra.mxu0 %v338_v12 }
  0x4c   :  { %364 = vmatpush.msra.mxu0 %v337_v13 }
  0xb8   :  { %v193_v15 = vpop.f32.mrf.mxu0 }
  0xb9   :  { %v194_v16 = vadd.f32 %v389_v14, %v193_v15 }
  0xbb   :  { %v213_v17 = vpop.f32.mrf.mxu1 }
  0xbc   :  { %v214_v18 = vadd.f32 %v213_v17, %v194_v16  ;;  %v233_v19 = vpop.f32.mrf.mxu2 }
  0xbe   :  { %v234_v20 = vadd.f32 %v233_v19, %v214_v18 }
  0xbf   :  { %v253_v21 = vpop.f32.mrf.mxu3 }
  0xc0   :  { %v254_v22 = vadd.f32 %v253_v21, %v234_v20 }
  0xc2   :  { %v273_v23 = vpop.f32.mrf.mxu0 }
  0xc3   :  { %v274_v24 = vadd.f32 %v273_v23, %v254_v22 }
  0xc4   :  { %v293_v25 = vpop.f32.mrf.mxu1 }
  0xc5   :  { %v294_v26 = vadd.f32 %v293_v25, %v274_v24 }
  0xc6   :  { %v313_v27 = vpop.f32.mrf.mxu2 }
  0xc7   :  { %v314_v28 = vadd.f32 %v313_v27, %v294_v26 }
  0xc8   :  { %v333_v29 = vpop.f32.mrf.mxu3 }
  0xc9   :  { %v334_v30 = vadd.f32 %v333_v29, %v314_v28 }
  0xcb   :  { %v336_v31 = vmax.f32 %v334_v30, 0.0 }
  0xcd   :  { %387 = vmatmul.msk.f32.vlgmr.msra.gmra.mxu0 %vm345_vm0, %v336_v31 }
 0x14a   :  { %v366_v33 = vpop.f32.mrf.mxu0 }
 0x14b   :  { %v367_v34 = vadd.f32 %v390_v32, %v366_v33 }
 0x14d   :  { %370 = vst.msk [vmem:[#allocation2] sm:$0x3] %vm369_vm1, %v367_v34 }
 0x14e   :  { %381 = dma.vmem_to_hbm [thread:$0]  %s377_s9, 32, %s379_s12, [#allocation3]  }
 0x14f   :  { %415 = dma.done.wait [#allocation3], 32  }
 0x150   :  { %416 = vsyncadd [#allocation3], 4294967264 }
 0x151   :  { %386 = vsyncpa [#allocation3], 1 }

// kernel: _lambda_.2
= control target key start
LH: loop header
LB: loop body
LE: loop exit
PB: predicated region body
PF: predicated region fallthrough
CT: control target
= control target key end

     0   :  { %s3137_s18 = smov 0   ;;  %s4025_s0 = inlined_call_operand.vmem [shape: f32[2,600,4], index: 0, kind: input, shape index: {}]   ;;  %s4026_s1 = inlined_call_operand.vmem [shape: f32[20,32], index: 1, kind: input, shape index: {}]   ;;  %s4027_s2 = inlined_call_operand.vmem [shape: f32[1,32], index: 2, kind: input, shape index: {}]   ;;  %s4028_s3 = inlined_call_operand.vmem [shape: f32[160,64], index: 3, kind: input, shape index: {}]   ;;  %s4029_s4 = inlined_call_operand.vmem [shape: f32[1,64], index: 4, kind: input, shape index: {}]   ;;  %s4030_s5 = inlined_call_operand.vmem [shape: f32[2,16,64], index: 5, kind: output, shape index: {}]  }
   0x1 LB: > { %s2659_s19 = sadd.s32 4294967295, %s3105_s18   ;;  %p2663_p0 = scmp.ge.s32.totalorder %s3105_s18, 1  ;;  %s3105_s18 = sphi %s3137_s18, %s15_s18  }
   0x2   : > { %p187_p1 = scmp.lt.s32.totalorder %s3105_s18, 3 }
   0x4   : > { %p188_p2 = pnand %p2663_p0, %p187_p1 }
   0x6   : > { %191 = sbr.rel (%p188_p2) target bundleno = 838 (0x346), region = 40 }
   0xb   : > { %v377_v0 = vld [vmem:[%s4026_s1 + $0x4] sm:$0xf]  ;;  %vm493_vm0 = vcmask 1043456   ;;  %v300_v1 = vld [vmem:[%s4026_s1] sm:$0xf]  ;;  %p215_p3 = scmp.lt.s32.totalorder %s2659_s19, 1 }
   0xc   : > { %3084 = vmatpush.msk.msra.mxu2 %vm493_vm0, %v377_v0  ;;  %3085 = vmatpush.msk.msra.mxu3 %vm493_vm0, %v377_v0  ;;  %v1315_v2 = vld [vmem:[%s4026_s1 + $0xc] sm:$0xf]  ;;  %v1678_v3 = vld [vmem:[%s4026_s1 + $0x10] sm:$0xf]  ;;  %vm378_vm1 = vcmask 31744   ;;  %vm2045_vm2 = vcmask 261120  }
   0xd   : > { %2781 = vmatpush.msk.msra.mxu1 %vm493_vm0, %v300_v1  ;;  %s4046_s19 = smov (!%p215_p3, %s2659_s19), 1  ;;  %2742 = vmatpush.msk.msra.mxu0 %vm493_vm0, %v377_v0  ;;  %v952_v10 = vld [vmem:[%s4026_s1 + $0x8] sm:$0xf]  ;;  %vm2083_vm3 = vcmask 254976   ;;  %vm2200_vm4 = vcmask 256000   ;;  %vm2580_vm5 = vcmask 523264  }
   0xe   : > { %2935 = vmatpush.msk.msrb.mxu3 %vm493_vm0, %v1315_v2  ;;  %3086 = vmatpush.msk.msrb.mxu2 %vm493_vm0, %v300_v1  ;;  %s3087_s28 = smul.u32 600, %s4046_s19  ;;  %s3083_s9 = sshll.u32 %s4046_s19, 4 }
   0xf   : > { %3012 = vmatpush.msk.msrb.mxu0 %vm493_vm0, %v1678_v3  ;;  %s224_s12 = scalar_lea.vmem %s4030_s5, %s3083_s9 }
  0x10   : > { %s3170_s6 = scalar_lea.vmem %s4025_s0, %s3087_s28 }
  0x11   : > { %v2721_v4 = vld [vmem:[%s3170_s6 + $0x111] ss:$2 sm:$0xff]  ;;  %v225_v6 = vld [vmem:[%s3170_s6] ss:$2 sm:$0xff]  ;;  %v2704_v7 = vld [vmem:[%s3170_s6 + $0x1] ss:$2 sm:$0xff] }
  0x12   : > { %v2725_v5 = vld [vmem:[%s3170_s6 + $0x151] ss:$2 sm:$0xff]  ;;  %2760 = vmatmul.msk.f32.vlgmr.msra.gmra.mxu2 %vm378_vm1, %v2721_v4  ;;  %2782 = vmatmul.msk.f32.vlgmr.msra.gmra.mxu1 %vm378_vm1, %v225_v6  ;;  %v2722_v8 = vld [vmem:[%s3170_s6 + $0x121] ss:$2 sm:$0xff]  ;;  %v2667_v11 = vld [vmem:[%s3170_s6 + $0x10] ss:$2 sm:$0xff] }
  0x13   : > { %2764 = vmatmul.msk.f32.vlgmr.msra.gmra.mxu3 %vm378_vm1, %v2725_v5  ;;  %2743 = vmatmul.msk.f32.vlgmr.msra.gmra.mxu0 %vm378_vm1, %v2704_v7  ;;  %v2726_v9 = vld [vmem:[%s3170_s6 + $0x161] ss:$2 sm:$0xff]  ;;  %v2705_v12 = vld [vmem:[%s3170_s6 + $0x11] ss:$2 sm:$0xff]  ;;  %v2668_v15 = vld [vmem:[%s3170_s6 + $0x20] ss:$2 sm:$0xff] }
  0x14   : > { %2858 = vmatpush.msk.msra.mxu2 %vm493_vm0, %v952_v10  ;;  %v2723_v13 = vld [vmem:[%s3170_s6 + $0x131] ss:$2 sm:$0xff]  ;;  %v2706_v16 = vld [vmem:[%s3170_s6 + $0x21] ss:$2 sm:$0xff]  ;;  %v2669_v19 = vld [vmem:[%s3170_s6 + $0x30] ss:$2 sm:$0xff] }
  0x15   : > { %v2727_v14 = vld [vmem:[%s3170_s6 + $0x171] ss:$2 sm:$0xff]  ;;  %v2724_v17 = vld [vmem:[%s3170_s6 + $0x141] ss:$2 sm:$0xff]  ;;  %v2670_v23 = vld [vmem:[%s3170_s6 + $0x40] ss:$2 sm:$0xff] }
  0x16   : > { %v2728_v18 = vld [vmem:[%s3170_s6 + $0x181] ss:$2 sm:$0xff]  ;;  %v2707_v20 = vld [vmem:[%s3170_s6 + $0x31] ss:$2 sm:$0xff]  ;;  %v2820_v26 = vld [vmem:[%s3170_s6 + $0x2] ss:$2 sm:$0xff] }
  0x17   : > { %v2729_v21 = vld [vmem:[%s3170_s6 + $0x191] ss:$2 sm:$0xff]  ;;  %v2703_v22 = vld [vmem:[%s3170_s6 + $0x250] ss:$2 sm:$0x3] }
  0x18   : > { %v2708_v24 = vld [vmem:[%s3170_s6 + $0x41] ss:$2 sm:$0xff]  ;;  %v2671_v27 = vld [vmem:[%s3170_s6 + $0x50] ss:$2 sm:$0xff]  ;;  %v2709_v28 = vld [vmem:[%s3170_s6 + $0x51] ss:$2 sm:$0xff] }
  0x19   : > { %v2730_v25 = vld [vmem:[%s3170_s6 + $0x1a1] ss:$2 sm:$0xff]  ;;  %v2731_v29 = vld [vmem:[%s3170_s6 + $0x1b1] ss:$2 sm:$0xff]  ;;  %v2821_v30 = vld [vmem:[%s3170_s6 + $0x12] ss:$2 sm:$0xff] }
  0x1a   : > { %2761 = vmatmul.msk.f32.gmra.mxu2 %vm378_vm1, %v2722_v8  ;;  %2783 = vmatmul.msk.f32.gmra.mxu1 %vm378_vm1, %v2667_v11  ;;  %v2672_v31 = vld [vmem:[%s3170_s6 + $0x60] ss:$2 sm:$0xff]  ;;  %v2710_v32 = vld [vmem:[%s3170_s6 + $0x61] ss:$2 sm:$0xff]  ;;  %v2673_v35 = vld [vmem:[%s3170_s6 + $0x70] ss:$2 sm:$0xff] }
  0x1b   : > { %2765 = vmatmul.msk.f32.gmra.mxu3 %vm378_vm1, %v2726_v9  ;;  %2744 = vmatmul.msk.f32.gmra.mxu0 %vm378_vm1, %v2705_v12  ;;  %v2732_v33 = vld [vmem:[%s3170_s6 + $0x1c1] ss:$2 sm:$0xff]  ;;  %v2822_v34 = vld [vmem:[%s3170_s6 + $0x22] ss:$2 sm:$0xff]  ;;  %v2711_v36 = vld [vmem:[%s3170_s6 + $0x71] ss:$2 sm:$0xff] }
  0x1c   : > { %v2733_v37 = vld [vmem:[%s3170_s6 + $0x1d1] ss:$2 sm:$0xff]  ;;  %v2823_v38 = vld [vmem:[%s3170_s6 + $0x32] ss:$2 sm:$0xff]  ;;  %v2712_v40 = vld [vmem:[%s3170_s6 + $0x81] ss:$2 sm:$0xff] }
  0x1d   : > { %v2674_v39 = vld [vmem:[%s3170_s6 + $0x80] ss:$2 sm:$0xff]  ;;  %v2734_v41 = vld [vmem:[%s3170_s6 + $0x1e1] ss:$2 sm:$0xff]  ;;  %v2675_v43 = vld [vmem:[%s3170_s6 + $0x90] ss:$2 sm:$0xff] }
  0x1e   : > { %v2824_v42 = vld [vmem:[%s3170_s6 + $0x42] ss:$2 sm:$0xff]  ;;  %v2713_v44 = vld [vmem:[%s3170_s6 + $0x91] ss:$2 sm:$0xff]  ;;  %v2825_v46 = vld [vmem:[%s3170_s6 + $0x52] ss:$2 sm:$0xff] }
  0x1f   : > { %v2735_v45 = vld [vmem:[%s3170_s6 + $0x1f1] ss:$2 sm:$0xff]  ;;  %v2676_v47 = vld [vmem:[%s3170_s6 + $0xa0] ss:$2 sm:$0xff]  ;;  %v2714_v48 = vld [vmem:[%s3170_s6 + $0xa1] ss:$2 sm:$0xff] }
  0x20   : > { %v2736_v49 = vld [vmem:[%s3170_s6 + $0x201] ss:$2 sm:$0xff]  ;;  %v2826_v50 = vld [vmem:[%s3170_s6 + $0x62] ss:$2 sm:$0xff]  ;;  %v2715_v52 = vld [vmem:[%s3170_s6 + $0xb1] ss:$2 sm:$0xff] }
  0x21   : > { %v2677_v51 = vld [vmem:[%s3170_s6 + $0xb0] ss:$2 sm:$0xff]  ;;  %v2737_v53 = vld [vmem:[%s3170_s6 + $0x211] ss:$2 sm:$0xff]  ;;  %v2678_v55 = vld [vmem:[%s3170_s6 + $0xc0] ss:$2 sm:$0xff] }
  0x22   : > { %2762 = vmatmul.msk.f32.gmra.mxu2 %vm378_vm1, %v2723_v13  ;;  %2784 = vmatmul.msk.f32.gmra.mxu1 %vm378_vm1, %v2668_v15  ;;  %v2827_v54 = vld [vmem:[%s3170_s6 + $0x72] ss:$2 sm:$0xff]  ;;  %v2716_v56 = vld [vmem:[%s3170_s6 + $0xc1] ss:$2 sm:$0xff]  ;;  %v2828_v58 = vld [vmem:[%s3170_s6 + $0x82] ss:$2 sm:$0xff] }
  0x23   : > { %2766 = vmatmul.msk.f32.gmra.mxu3 %vm378_vm1, %v2727_v14  ;;  %2745 = vmatmul.msk.f32.gmra.mxu0 %vm378_vm1, %v2706_v16  ;;  %v2738_v57 = vld [vmem:[%s3170_s6 + $0x221] ss:$2 sm:$0xff]  ;;  %v2679_v59 = vld [vmem:[%s3170_s6 + $0xd0] ss:$2 sm:$0xff]  ;;  %v2717_v60 = vld [vmem:[%s3170_s6 + $0xd1] ss:$2 sm:$0xff] }
  0x24   : > { %v2739_v61 = vld [vmem:[%s3170_s6 + $0x231] ss:$2 sm:$0xff]  ;;  %v2829_v62 = vld [vmem:[%s3170_s6 + $0x92] ss:$2 sm:$0xff]  ;;  %v2718_v0 = vld [vmem:[%s3170_s6 + $0xe1] ss:$2 sm:$0xff] }
  0x25   : > { %v2680_v63 = vld [vmem:[%s3170_s6 + $0xe0] ss:$2 sm:$0xff]  ;;  %v2740_v1 = vld [vmem:[%s3170_s6 + $0x241] ss:$2 sm:$0xff]  ;;  %v2681_v3 = vld [vmem:[%s3170_s6 + $0xf0] ss:$2 sm:$0xff] }
  0x26   : > { %v2830_v2 = vld [vmem:[%s3170_s6 + $0xa2] ss:$2 sm:$0xff]  ;;  %v2719_v4 = vld [vmem:[%s3170_s6 + $0xf1] ss:$2 sm:$0xff]  ;;  %v2831_v6 = vld [vmem:[%s3170_s6 + $0xb2] ss:$2 sm:$0xff] }
  0x27   : > { %v2741_v5 = vld [vmem:[%s3170_s6 + $0x251] ss:$2 sm:$0x3]  ;;  %v2682_v7 = vld [vmem:[%s3170_s6 + $0x100] ss:$2 sm:$0xff] }
  0x28   : > { %v2720_v9 = vld [vmem:[%s3170_s6 + $0x101] ss:$2 sm:$0xff]  ;;  %v2832_v11 = vld [vmem:[%s3170_s6 + $0xc2] ss:$2 sm:$0xff] }
  0x29   : > { %v2897_v12 = vld [vmem:[%s3170_s6 + $0x3] ss:$2 sm:$0xff]  ;;  %v2683_v13 = vld [vmem:[%s3170_s6 + $0x110] ss:$2 sm:$0xff] }
  0x2a   : > { %2763 = vmatmul.msk.f32.gmra.mxu2 %vm378_vm1, %v2724_v17  ;;  %2785 = vmatmul.msk.f32.gmra.mxu1 %vm378_vm1, %v2669_v19  ;;  %v2974_v15 = vld [vmem:[%s3170_s6 + $0x4] ss:$2 sm:$0xff]  ;;  %v2898_v19 = vld [vmem:[%s3170_s6 + $0x13] ss:$2 sm:$0xff] }
  0x2b   : > { %2767 = vmatmul.msk.f32.gmra.mxu3 %vm378_vm1, %v2728_v18  ;;  %2746 = vmatmul.msk.f32.gmra.mxu0 %vm378_vm1, %v2707_v20  ;;  %v2833_v18 = vld [vmem:[%s3170_s6 + $0xd2] ss:$2 sm:$0xff] }
  0x2c   : > { %v2684_v20 = vld [vmem:[%s3170_s6 + $0x120] ss:$2 sm:$0xff] }
  0x32   : > { %2819 = vmatmul.msk.f32.vlgmr.msrb.gmra.mxu2 %vm378_vm1, %v2703_v22  ;;  %2786 = vmatmul.msk.f32.gmra.mxu1 %vm378_vm1, %v2670_v23  ;;  %v2975_v22 = vld [vmem:[%s3170_s6 + $0x14] ss:$2 sm:$0xff] }
  0x33   : > { %2768 = vmatmul.msk.f32.gmra.mxu3 %vm378_vm1, %v2729_v21  ;;  %2747 = vmatmul.msk.f32.gmra.mxu0 %vm378_vm1, %v2708_v24 }
  0x3a   : > { %2859 = vmatmul.msk.f32.vlgmr.msra.gmra.mxu2 %vm378_vm1, %v2820_v26  ;;  %2787 = vmatmul.msk.f32.gmra.mxu1 %vm378_vm1, %v2671_v27  ;;  %v2899_v26 = vld [vmem:[%s3170_s6 + $0x23] ss:$2 sm:$0xff]  ;;  %v2685_v27 = vld [vmem:[%s3170_s6 + $0x130] ss:$2 sm:$0xff] }
  0x3b   : > { %2769 = vmatmul.msk.f32.gmra.mxu3 %vm378_vm1, %v2730_v25  ;;  %2748 = vmatmul.msk.f32.gmra.mxu0 %vm378_vm1, %v2709_v28  ;;  %v2834_v25 = vld [vmem:[%s3170_s6 + $0xe2] ss:$2 sm:$0xff] }
  0x42   : > { %2860 = vmatmul.msk.f32.gmra.mxu2 %vm378_vm1, %v2821_v30  ;;  %2788 = vmatmul.msk.f32.gmra.mxu1 %vm378_vm1, %v2672_v31  ;;  %v2835_v31 = vld [vmem:[%s3170_s6 + $0xf2] ss:$2 sm:$0xff] }
  0x43   : > { %2770 = vmatmul.msk.f32.gmra.mxu3 %vm378_vm1, %v2731_v29  ;;  %2749 = vmatmul.msk.f32.gmra.mxu0 %vm378_vm1, %v2710_v32  ;;  %v2976_v29 = vld [vmem:[%s3170_s6 + $0x24] ss:$2 sm:$0xff]  ;;  %v2900_v32 = vld [vmem:[%s3170_s6 + $0x33] ss:$2 sm:$0xff] }
  0x4a   : > { %2861 = vmatmul.msk.f32.gmra.mxu2 %vm378_vm1, %v2822_v34  ;;  %2789 = vmatmul.msk.f32.gmra.mxu1 %vm378_vm1, %v2673_v35  ;;  %v2977_v35 = vld [vmem:[%s3170_s6 + $0x34] ss:$2 sm:$0xff] }
  0x4b   : > { %2771 = vmatmul.msk.f32.gmra.mxu3 %vm378_vm1, %v2732_v33  ;;  %2750 = vmatmul.msk.f32.gmra.mxu0 %vm378_vm1, %v2711_v36  ;;  %v2686_v33 = vld [vmem:[%s3170_s6 + $0x140] ss:$2 sm:$0xff] }
  0x52   : > { %2862 = vmatmul.msk.f32.gmra.mxu2 %vm378_vm1, %v2823_v38  ;;  %2790 = vmatmul.msk.f32.gmra.mxu1 %vm378_vm1, %v2674_v39  ;;  %v2836_v38 = vld [vmem:[%s3170_s6 + $0x102] ss:$2 sm:$0xff]  ;;  %v2901_v39 = vld [vmem:[%s3170_s6 + $0x43] ss:$2 sm:$0xff] }
  0x53   : > { %2772 = vmatmul.msk.f32.gmra.mxu3 %vm378_vm1, %v2733_v37  ;;  %2751 = vmatmul.msk.f32.gmra.mxu0 %vm378_vm1, %v2712_v40  ;;  %v2687_v40 = vld [vmem:[%s3170_s6 + $0x150] ss:$2 sm:$0xff] }
  0x5a   : > { %2863 = vmatmul.msk.f32.gmra.mxu2 %vm378_vm1, %v2824_v42  ;;  %2791 = vmatmul.msk.f32.gmra.mxu1 %vm378_vm1, %v2675_v43  ;;  %v2978_v42 = vld [vmem:[%s3170_s6 + $0x44] ss:$2 sm:$0xff] }
  0x5b   : > { %2773 = vmatmul.msk.f32.gmra.mxu3 %vm378_vm1, %v2734_v41  ;;  %2752 = vmatmul.msk.f32.gmra.mxu0 %vm378_vm1, %v2713_v44 }
  0x62   : > { %2864 = vmatmul.msk.f32.gmra.mxu2 %vm378_vm1, %v2825_v46  ;;  %2792 = vmatmul.msk.f32.gmra.mxu1 %vm378_vm1, %v2676_v47  ;;  %v2837_v46 = vld [vmem:[%s3170_s6 + $0x112] ss:$2 sm:$0xff]  ;;  %v2902_v47 = vld [vmem:[%s3170_s6 + $0x53] ss:$2 sm:$0xff] }
  0x63   : > { %2774 = vmatmul.msk.f32.gmra.mxu3 %vm378_vm1, %v2735_v45  ;;  %2753 = vmatmul.msk.f32.gmra.mxu0 %vm378_vm1, %v2714_v48  ;;  %v2688_v48 = vld [vmem:[%s3170_s6 + $0x160] ss:$2 sm:$0xff] }
  0x6a   : > { %2865 = vmatmul.msk.f32.gmra.mxu2 %vm378_vm1, %v2826_v50  ;;  %2793 = vmatmul.msk.f32.gmra.mxu1 %vm378_vm1, %v2677_v51  ;;  %v2979_v50 = vld [vmem:[%s3170_s6 + $0x54] ss:$2 sm:$0xff] }
  0x6b   : > { %2775 = vmatmul.msk.f32.gmra.mxu3 %vm378_vm1, %v2736_v49  ;;  %2754 = vmatmul.msk.f32.gmra.mxu0 %vm378_vm1, %v2715_v52 }
  0x72   : > { %2866 = vmatmul.msk.f32.gmra.mxu2 %vm378_vm1, %v2827_v54  ;;  %2794 = vmatmul.msk.f32.gmra.mxu1 %vm378_vm1, %v2678_v55  ;;  %v2838_v54 = vld [vmem:[%s3170_s6 + $0x122] ss:$2 sm:$0xff]  ;;  %v2903_v55 = vld [vmem:[%s3170_s6 + $0x63] ss:$2 sm:$0xff] }
  0x73   : > { %2776 = vmatmul.msk.f32.gmra.mxu3 %vm378_vm1, %v2737_v53  ;;  %2755 = vmatmul.msk.f32.gmra.mxu0 %vm378_vm1, %v2716_v56  ;;  %v2689_v56 = vld [vmem:[%s3170_s6 + $0x170] ss:$2 sm:$0xff] }
  0x7a   : > { %2867 = vmatmul.msk.f32.gmra.mxu2 %vm378_vm1, %v2828_v58  ;;  %2795 = vmatmul.msk.f32.gmra.mxu1 %vm378_vm1, %v2679_v59  ;;  %v2980_v58 = vld [vmem:[%s3170_s6 + $0x64] ss:$2 sm:$0xff] }
  0x7b   : > { %2777 = vmatmul.msk.f32.gmra.mxu3 %vm378_vm1, %v2738_v57  ;;  %2756 = vmatmul.msk.f32.gmra.mxu0 %vm378_vm1, %v2717_v60 }
  0x82   : > { %2868 = vmatmul.msk.f32.gmra.mxu2 %vm378_vm1, %v2829_v62  ;;  %2796 = vmatmul.msk.f32.gmra.mxu1 %vm378_vm1, %v2680_v63  ;;  %v2839_v62 = vld [vmem:[%s3170_s6 + $0x132] ss:$2 sm:$0xff]  ;;  %v2904_v63 = vld [vmem:[%s3170_s6 + $0x73] ss:$2 sm:$0xff] }
  0x83   : > { %2778 = vmatmul.msk.f32.gmra.mxu3 %vm378_vm1, %v2739_v61  ;;  %2757 = vmatmul.msk.f32.gmra.mxu0 %vm378_vm1, %v2718_v0  ;;  %v2690_v0 = vld [vmem:[%s3170_s6 + $0x180] ss:$2 sm:$0xff] }
  0x8a   : > { %2869 = vmatmul.msk.f32.gmra.mxu2 %vm378_vm1, %v2830_v2  ;;  %2797 = vmatmul.msk.f32.gmra.mxu1 %vm378_vm1, %v2681_v3  ;;  %v2981_v2 = vld [vmem:[%s3170_s6 + $0x74] ss:$2 sm:$0xff] }
  0x8b   : > { %2779 = vmatmul.msk.f32.gmra.mxu3 %vm378_vm1, %v2740_v1  ;;  %2758 = vmatmul.msk.f32.gmra.mxu0 %vm378_vm1, %v2719_v4  ;;  %v2840_v4 = vld [vmem:[%s3170_s6 + $0x142] ss:$2 sm:$0xff] }
  0x8f   : > { %v3376_v43 = vpop.f32.mrf.mxu1 }
  0x90   : > { %v3307_v8 = vpop.f32.mrf.mxu0 }
  0x92   : > { %2870 = vmatmul.msk.f32.gmra.mxu2 %vm378_vm1, %v2831_v6  ;;  %2798 = vmatmul.msk.f32.gmra.mxu1 %vm378_vm1, %v2682_v7  ;;  %v2691_v7 = vld [vmem:[%s3170_s6 + $0x190] ss:$2 sm:$0xff] }
  0x93   : > { %2780 = vmatmul.msk.f32.gmra.mxu3 %vm378_vm1, %v2741_v5  ;;  %2759 = vmatmul.msk.f32.gmra.mxu0 %vm378_vm1, %v2720_v9  ;;  %v2905_v5 = vld [vmem:[%s3170_s6 + $0x83] ss:$2 sm:$0xff] }
  0x95   : > { %v3326_v16 = vpop.f32.mrf.mxu2 }
  0x96   : > { %v3314_v10 = vpop.f32.mrf.mxu3 }
  0x97   : > { %v3396_v51 = vpop.f32.mrf.mxu1 }
  0x98   : > { %v3319_v14 = vpop.f32.mrf.mxu0 }
  0x9a   : > { %2871 = vmatmul.msk.f32.gmra.mxu2 %vm378_vm1, %v2832_v11  ;;  %2799 = vmatmul.msk.f32.gmra.mxu1 %vm378_vm1, %v2683_v13  ;;  %v2982_v11 = vld [vmem:[%s3170_s6 + $0x84] ss:$2 sm:$0xff] }
  0x9b   : > { %2936 = vmatmul.msk.f32.vlgmr.msrb.gmra.mxu3 %vm378_vm1, %v2897_v12  ;;  %3013 = vmatmul.msk.f32.vlgmr.msrb.gmra.mxu0 %vm378_vm1, %v2974_v15  ;;  %v2841_v15 = vld [vmem:[%s3170_s6 + $0x152] ss:$2 sm:$0xff] }
  0x9d   : > { %v3342_v24 = vpop.f32.mrf.mxu2 }
  0x9e   : > { %v3328_v17 = vpop.f32.mrf.mxu3 }
  0x9f   : > { %v3414_v60 = vpop.f32.mrf.mxu1 }
  0xa0   : > { %v3333_v21 = vpop.f32.mrf.mxu0 }
  0xa2   : > { %2872 = vmatmul.msk.f32.gmra.mxu2 %vm378_vm1, %v2833_v18  ;;  %2800 = vmatmul.msk.f32.gmra.mxu1 %vm378_vm1, %v2684_v20  ;;  %v2906_v18 = vld [vmem:[%s3170_s6 + $0x93] ss:$2 sm:$0xff] }
  0xa3   : > { %2937 = vmatmul.msk.f32.gmra.mxu3 %vm378_vm1, %v2898_v19  ;;  %3014 = vmatmul.msk.f32.gmra.mxu0 %vm378_vm1, %v2975_v22  ;;  %v2692_v19 = vld [vmem:[%s3170_s6 + $0x1a0] ss:$2 sm:$0xff] }
  0xa4   : > { %v2983_v22 = vld [vmem:[%s3170_s6 + $0x94] ss:$2 sm:$0xff] }
  0xa5   : > { %v3362_v36 = vpop.f32.mrf.mxu2 }
  0xa6   : > { %v3340_v23 = vpop.f32.mrf.mxu3 }
  0xa7   : > { %v3432_v6 = vpop.f32.mrf.mxu1 }
  0xa8   : > { %v3347_v28 = vpop.f32.mrf.mxu0 }
  0xaa   : > { %2873 = vmatmul.msk.f32.gmra.mxu2 %vm378_vm1, %v2834_v25  ;;  %2801 = vmatmul.msk.f32.gmra.mxu1 %vm378_vm1, %v2685_v27  ;;  %v2232_v27 = vld [vmem:[%s4028_s3 + $0x38] sm:$0xff] }
  0xab   : > { %2938 = vmatmul.msk.f32.gmra.mxu3 %vm378_vm1, %v2899_v26  ;;  %3015 = vmatmul.msk.f32.gmra.mxu0 %vm378_vm1, %v2976_v29 }
  0xac   : > { %2263 = vmatpush.msrb.mxu1 %v2232_v27 }
  0xad   : > { %v3380_v44 = vpop.f32.mrf.mxu2 }
  0xae   : > { %v3354_v30 = vpop.f32.mrf.mxu3 }
  0xaf   : > { %v3452_v25 = vpop.f32.mrf.mxu1 }
  0xb0   : > { %v3359_v34 = vpop.f32.mrf.mxu0 }
  0xb2   : > { %2874 = vmatmul.msk.f32.gmra.mxu2 %vm378_vm1, %v2835_v31  ;;  %2802 = vmatmul.msk.f32.gmra.mxu1 %vm378_vm1, %v2686_v33  ;;  %v2842_v31 = vld [vmem:[%s3170_s6 + $0x162] ss:$2 sm:$0xff] }
  0xb3   : > { %2939 = vmatmul.msk.f32.gmra.mxu3 %vm378_vm1, %v2900_v32  ;;  %3016 = vmatmul.msk.f32.gmra.mxu0 %vm378_vm1, %v2977_v35  ;;  %v2907_v32 = vld [vmem:[%s3170_s6 + $0xa3] ss:$2 sm:$0xff]  ;;  %v2693_v33 = vld [vmem:[%s3170_s6 + $0x1b0] ss:$2 sm:$0xff] }
  0xb5   : > { %v3398_v52 = vpop.f32.mrf.mxu2 }
  0xb6   : > { %v3368_v37 = vpop.f32.mrf.mxu3  ;;  %4031 = vst [vmem:[#allocation5_spill] sm:$0xff] %v3398_v52 }
  0xb8   : > { %v3373_v41 = vpop.f32.mrf.mxu0 }
  0xba   : > { %2875 = vmatmul.msk.f32.gmra.mxu2 %vm378_vm1, %v2836_v38  ;;  %2803 = vmatmul.msk.f32.gmra.mxu1 %vm378_vm1, %v2687_v40  ;;  %v2984_v38 = vld [vmem:[%s3170_s6 + $0xa4] ss:$2 sm:$0xff] }
  0xbb   : > { %2940 = vmatmul.msk.f32.gmra.mxu3 %vm378_vm1, %v2901_v39  ;;  %3017 = vmatmul.msk.f32.gmra.mxu0 %vm378_vm1, %v2978_v42  ;;  %v3475_v39 = vpop.f32.mrf.mxu1 }
  0xbd   : > { %v3416_v61 = vpop.f32.mrf.mxu2 }
  0xbe   : > { %v3384_v45 = vpop.f32.mrf.mxu3 }
  0xc0   : > { %v3389_v49 = vpop.f32.mrf.mxu0 }
  0xc2   : > { %2876 = vmatmul.msk.f32.gmra.mxu2 %vm378_vm1, %v2837_v46  ;;  %2804 = vmatmul.msk.f32.gmra.mxu1 %vm378_vm1, %v2688_v48  ;;  %v2843_v46 = vld [vmem:[%s3170_s6 + $0x172] ss:$2 sm:$0xff] }
  0xc3   : > { %2941 = vmatmul.msk.f32.gmra.mxu3 %vm378_vm1, %v2902_v47  ;;  %3018 = vmatmul.msk.f32.gmra.mxu0 %vm378_vm1, %v2979_v50  ;;  %v2908_v47 = vld [vmem:[%s3170_s6 + $0xb3] ss:$2 sm:$0xff]  ;;  %v2694_v48 = vld [vmem:[%s3170_s6 + $0x1c0] ss:$2 sm:$0xff] }
  0xc5   : > { %v3438_v12 = vpop.f32.mrf.mxu2 }
  0xc6   : > { %v3400_v53 = vpop.f32.mrf.mxu3 }
  0xc8   : > { %v3405_v57 = vpop.f32.mrf.mxu0 }
  0xca   : > { %2877 = vmatmul.msk.f32.gmra.mxu2 %vm378_vm1, %v2838_v54  ;;  %2805 = vmatmul.msk.f32.gmra.mxu1 %vm378_vm1, %v2689_v56  ;;  %v2985_v54 = vld [vmem:[%s3170_s6 + $0xb4] ss:$2 sm:$0xff]  ;;  %v3493_v56 = vpop.f32.mrf.mxu1 }
  0xcb   : > { %2942 = vmatmul.msk.f32.gmra.mxu3 %vm378_vm1, %v2903_v55  ;;  %3019 = vmatmul.msk.f32.gmra.mxu0 %vm378_vm1, %v2980_v58 }
  0xcd   : > { %v3456_v26 = vpop.f32.mrf.mxu2 }
  0xce   : > { %v3412_v59 = vpop.f32.mrf.mxu3 }
  0xd0   : > { %v3421_v1 = vpop.f32.mrf.mxu0 }
  0xd2   : > { %2878 = vmatmul.msk.f32.gmra.mxu2 %vm378_vm1, %v2839_v62  ;;  %2806 = vmatmul.msk.f32.gmra.mxu1 %vm378_vm1, %v2690_v0  ;;  %v2844_v62 = vld [vmem:[%s3170_s6 + $0x182] ss:$2 sm:$0xff] }
  0xd3   : > { %2943 = vmatmul.msk.f32.gmra.mxu3 %vm378_vm1, %v2904_v63  ;;  %3020 = vmatmul.msk.f32.gmra.mxu0 %vm378_vm1, %v2981_v2  ;;  %v2909_v63 = vld [vmem:[%s3170_s6 + $0xc3] ss:$2 sm:$0xff]  ;;  %v2695_v0 = vld [vmem:[%s3170_s6 + $0x1d0] ss:$2 sm:$0xff] }
  0xd5   : > { %v3477_v40 = vpop.f32.mrf.mxu2 }
  0xd6   : > { %v3428_v3 = vpop.f32.mrf.mxu3 }
  0xd8   : > { %v3435_v9 = vpop.f32.mrf.mxu0 }
  0xda   : > { %2879 = vmatmul.msk.f32.gmra.mxu2 %vm378_vm1, %v2840_v4  ;;  %2807 = vmatmul.msk.f32.gmra.mxu1 %vm378_vm1, %v2691_v7  ;;  %v2986_v4 = vld [vmem:[%s3170_s6 + $0xc4] ss:$2 sm:$0xff] }
  0xdb   : > { %2944 = vmatmul.msk.f32.gmra.mxu3 %vm378_vm1, %v2905_v5  ;;  %3021 = vmatmul.msk.f32.gmra.mxu0 %vm378_vm1, %v2982_v11  ;;  %v2845_v7 = vld [vmem:[%s3170_s6 + $0x192] ss:$2 sm:$0xff]  ;;  %v2910_v11 = vld [vmem:[%s3170_s6 + $0xd3] ss:$2 sm:$0xff] }
  0xdd   : > { %v3495_v58 = vpop.f32.mrf.mxu2 }
  0xde   : > { %v3444_v13 = vpop.f32.mrf.mxu3 }
  0xe0   : > { %v3449_v20 = vpop.f32.mrf.mxu0 }
  0xe2   : > { %2880 = vmatmul.msk.f32.gmra.mxu2 %vm378_vm1, %v2841_v15  ;;  %2808 = vmatmul.msk.f32.gmra.mxu1 %vm378_vm1, %v2692_v19  ;;  %v3511_v15 = vpop.f32.mrf.mxu1 }
  0xe3   : > { %2945 = vmatmul.msk.f32.gmra.mxu3 %vm378_vm1, %v2906_v18  ;;  %3022 = vmatmul.msk.f32.gmra.mxu0 %vm378_vm1, %v2983_v22  ;;  %v2696_v18 = vld [vmem:[%s3170_s6 + $0x1e0] ss:$2 sm:$0xff] }
  0xe4   : > { %v2987_v22 = vld [vmem:[%s3170_s6 + $0xd4] ss:$2 sm:$0xff] }
  0xe5   : > { %v3517_v27 = vpop.f32.mrf.mxu2 }
  0xe6   : > { %v3463_v29 = vpop.f32.mrf.mxu3 }
  0xe8   : > { %v3468_v35 = vpop.f32.mrf.mxu0 }
  0xea   : > { %2881 = vmatmul.msk.f32.gmra.mxu2 %vm378_vm1, %v2842_v31  ;;  %2809 = vmatmul.msk.f32.gmra.mxu1 %vm378_vm1, %v2693_v33  ;;  %v2846_v33 = vld [vmem:[%s3170_s6 + $0x1a2] ss:$2 sm:$0xff] }
  0xeb   : > { %2946 = vmatmul.msk.f32.gmra.mxu3 %vm378_vm1, %v2907_v32  ;;  %3023 = vmatmul.msk.f32.gmra.mxu0 %vm378_vm1, %v2984_v38  ;;  %v2216_v32 = vld [vmem:[%s4028_s3 + $0x18] sm:$0xff]  ;;  %v2911_v38 = vld [vmem:[%s3170_s6 + $0xe3] ss:$2 sm:$0xff] }
  0xec   : > { %2316 = vmatpush.msrb.mxu2 %v2216_v32 }
  0xee   : > { %v3479_v42 = vpop.f32.mrf.mxu3 }
  0xef   : > { %4032 = vst [vmem:[#allocation6_spill] sm:$0xff] %v3479_v42 }
  0xf0   : > { %v3484_v50 = vpop.f32.mrf.mxu0 }
  0xf2   : > { %2882 = vmatmul.msk.f32.gmra.mxu2 %vm378_vm1, %v2843_v46  ;;  %2810 = vmatmul.msk.f32.gmra.mxu1 %vm378_vm1, %v2694_v48  ;;  %v2697_v46 = vld [vmem:[%s3170_s6 + $0x1f0] ss:$2 sm:$0xff] }
  0xf3   : > { %2947 = vmatmul.msk.f32.gmra.mxu3 %vm378_vm1, %v2908_v47  ;;  %3024 = vmatmul.msk.f32.gmra.mxu0 %vm378_vm1, %v2985_v54  ;;  %v2988_v48 = vld [vmem:[%s3170_s6 + $0xe4] ss:$2 sm:$0xff]  ;;  %v3534_v54 = vpop.f32.mrf.mxu1 }
  0xf6   : > { %v3491_v55 = vpop.f32.mrf.mxu3 }
  0xf7   : > { %4033 = vst [vmem:[#allocation7_spill] sm:$0xff] %v3491_v55  ;;  %v2701_v55 = vld [vmem:[%s3170_s6 + $0x230] ss:$2 sm:$0xff] }
  0xf8   : > { %v3500_v2 = vpop.f32.mrf.mxu0 }
  0xfa   : > { %2883 = vmatmul.msk.f32.gmra.mxu2 %vm378_vm1, %v2844_v62  ;;  %2811 = vmatmul.msk.f32.gmra.mxu1 %vm378_vm1, %v2695_v0  ;;  %v3538_v62 = vpop.f32.mrf.mxu2  ;;  %v2847_v0 = vld [vmem:[%s3170_s6 + $0x1b2] ss:$2 sm:$0xff] }
  0xfb   : > { %2948 = vmatmul.msk.f32.gmra.mxu3 %vm378_vm1, %v2909_v63  ;;  %3025 = vmatmul.msk.f32.gmra.mxu0 %vm378_vm1, %v2986_v4  ;;  %v2912_v4 = vld [vmem:[%s3170_s6 + $0xf3] ss:$2 sm:$0xff] }
  0xfe   : > { %v3507_v5 = vpop.f32.mrf.mxu3 }
  0xff   : > { %4034 = vst [vmem:[#allocation8_spill] sm:$0xff] %v3507_v5  ;;  %v2991_v5 = vld [vmem:[%s3170_s6 + $0x114] ss:$2 sm:$0xff] }
 0x100   : > { %v3514_v19 = vpop.f32.mrf.mxu0 }
 0x102   : > { %2884 = vmatmul.msk.f32.gmra.mxu2 %vm378_vm1, %v2845_v7  ;;  %2812 = vmatmul.msk.f32.gmra.mxu1 %vm378_vm1, %v2696_v18  ;;  %v2698_v7 = vld [vmem:[%s3170_s6 + $0x200] ss:$2 sm:$0xff]  ;;  %v3556_v32 = vpop.f32.mrf.mxu2 }
 0x103   : > { %2949 = vmatmul.msk.f32.gmra.mxu3 %vm378_vm1, %v2910_v11  ;;  %3026 = vmatmul.msk.f32.gmra.mxu0 %vm378_vm1, %v2987_v22  ;;  %v2989_v18 = vld [vmem:[%s3170_s6 + $0xf4] ss:$2 sm:$0xff]  ;;  %v3554_v22 = vpop.f32.mrf.mxu1 }
 0x106   : > { %v3523_v31 = vpop.f32.mrf.mxu3 }
 0x107   : > { %4035 = vst [vmem:[#allocation9_spill] sm:$0xff] %v3523_v31 }
 0x108   : > { %v3531_v47 = vpop.f32.mrf.mxu0 }
 0x10a   : > { %2885 = vmatmul.msk.f32.gmra.mxu2 %vm378_vm1, %v2846_v33  ;;  %2813 = vmatmul.msk.f32.gmra.mxu1 %vm378_vm1, %v2697_v46  ;;  %v2913_v46 = vld [vmem:[%s3170_s6 + $0x103] ss:$2 sm:$0xff] }
 0x10b   : > { %2950 = vmatmul.msk.f32.gmra.mxu3 %vm378_vm1, %v2911_v38  ;;  %3027 = vmatmul.msk.f32.gmra.mxu0 %vm378_vm1, %v2988_v48  ;;  %v2848_v38 = vld [vmem:[%s3170_s6 + $0x1c2] ss:$2 sm:$0xff]  ;;  %v3576_v31 = vpop.f32.mrf.mxu1 }
 0x10c   : > { %v2699_v48 = vld [vmem:[%s3170_s6 + $0x210] ss:$2 sm:$0xff] }
 0x10e   : > { %v3542_v63 = vpop.f32.mrf.mxu3 }
 0x10f   : > { %4036 = vst [vmem:[#allocation10_spill] sm:$0xff] %v3542_v63  ;;  %v3574_v63 = vld [vmem:[%s4027_s2] ss:$0 sm:$0xff] }
 0x110   : > { %v3547_v11 = vpop.f32.mrf.mxu0 }
 0x112   : > { %2886 = vmatmul.msk.f32.gmra.mxu2 %vm378_vm1, %v2847_v0  ;;  %2814 = vmatmul.msk.f32.gmra.mxu1 %vm378_vm1, %v2698_v7  ;;  %v2990_v0 = vld [vmem:[%s3170_s6 + $0x104] ss:$2 sm:$0xff] }
 0x113   : > { %2951 = vmatmul.msk.f32.gmra.mxu3 %vm378_vm1, %v2912_v4  ;;  %3028 = vmatmul.msk.f32.gmra.mxu0 %vm378_vm1, %v2989_v18  ;;  %v763_v4 = vadd.f32 %v3376_v43, %v3307_v8  ;;  %v3578_v8 = vpop.f32.mrf.mxu2  ;;  %v2849_v43 = vld [vmem:[%s3170_s6 + $0x1d2] ss:$2 sm:$0xff]  ;;  %v3597_v42 = vpop.f32.mrf.mxu1 }
 0x115   : > { %v1201_v7 = vadd.f32 %v3416_v61, %v763_v4  ;;  %v766_v61 = vadd.f32 %v3396_v51, %v3319_v14  ;;  %v2850_v14 = vld [vmem:[%s3170_s6 + $0x1e2] ss:$2 sm:$0xff]  ;;  %v2915_v51 = vld [vmem:[%s3170_s6 + $0x123] ss:$2 sm:$0xff] }
 0x116   : > { %v3558_v33 = vpop.f32.mrf.mxu3 }
 0x117   : > { %4037 = vst [vmem:[#allocation11_spill] sm:$0xff] %v3558_v33 }
 0x118   : > { %v1813_v52 = vpop.f32.mrf.mxu0 }
 0x11a   : > { %2887 = vmatmul.msk.f32.gmra.mxu2 %vm378_vm1, %v2848_v38  ;;  %2815 = vmatmul.msk.f32.gmra.mxu1 %vm378_vm1, %v2699_v48  ;;  %v2914_v38 = vld [vmem:[%s3170_s6 + $0x113] ss:$2 sm:$0xff]  ;;  %v2700_v48 = vld [vmem:[%s3170_s6 + $0x220] ss:$2 sm:$0xff] }
 0x11b   : > { %2952 = vmatmul.msk.f32.gmra.mxu3 %vm378_vm1, %v2913_v46  ;;  %3029 = vmatmul.msk.f32.gmra.mxu0 %vm378_vm1, %v2990_v0 }
 0x11e   : > { %v1450_v18 = vpop.f32.mrf.mxu3 }
 0x11f   : > { %v1564_v33 = vadd.f32 %v1450_v18, %v1201_v7 }
 0x120   : > { %v1816_v0 = vpop.f32.mrf.mxu0 }
 0x121   : > { %v1927_v46 = vadd.f32 %v1813_v52, %v1564_v33  ;;  %v1202_v52 = vadd.f32 %v3438_v12, %v766_v61  ;;  %v769_v12 = vadd.f32 %v3414_v60, %v3333_v21  ;;  %v2916_v21 = vld [vmem:[%s3170_s6 + $0x133] ss:$2 sm:$0xff] }
 0x122   : > { %2888 = vmatmul.msk.f32.gmra.mxu2 %vm378_vm1, %v2849_v43  ;;  %2816 = vmatmul.msk.f32.gmra.mxu1 %vm378_vm1, %v2700_v48  ;;  %v3599_v48 = vpop.f32.mrf.mxu2 }
 0x123   : > { %v1969_v4 = vadd.f32 %v3574_v63, %v1927_v46  ;;  %2953 = vmatmul.msk.f32.gmra.mxu3 %vm378_vm1, %v2914_v38  ;;  %3030 = vmatmul.msk.f32.gmra.mxu0 %vm378_vm1, %v2991_v5  ;;  %v2992_v38 = vld [vmem:[%s3170_s6 + $0x124] ss:$2 sm:$0xff] }
 0x125   : > { %v2007_v33 = vmax.f32 %v1969_v4, 0.0 }
 0x126   : > { %v1453_v7 = vpop.f32.mrf.mxu3 }
 0x127   : > { %2046 = vst.msk [vmem:[#allocation2] sm:$0xff] %vm2045_vm2, %v2007_v33  ;;  %v1565_v18 = vadd.f32 %v1453_v7, %v1202_v52  ;;  %v2851_v33 = vld [vmem:[%s3170_s6 + $0x1f2] ss:$2 sm:$0xff] }
 0x128   : > { %v1819_v43 = vpop.f32.mrf.mxu0  ;;  %v2702_v7 = vld [vmem:[%s3170_s6 + $0x240] ss:$2 sm:$0xff] }
 0x129   : > { %v1928_v46 = vadd.f32 %v1816_v0, %v1565_v18  ;;  %v1203_v0 = vadd.f32 %v3456_v26, %v769_v12  ;;  %v3619_v26 = vpop.f32.mrf.mxu1 }
 0x12a   : > { %2889 = vmatmul.msk.f32.gmra.mxu2 %vm378_vm1, %v2850_v14  ;;  %2817 = vmatmul.msk.f32.gmra.mxu1 %vm378_vm1, %v2701_v55  ;;  %v2993_v14 = vld [vmem:[%s3170_s6 + $0x134] ss:$2 sm:$0xff]  ;;  %v772_v55 = vadd.f32 %v3432_v6, %v3347_v28 }
 0x12b   : > { %v1970_v5 = vadd.f32 %v3574_v63, %v1928_v46  ;;  %2954 = vmatmul.msk.f32.gmra.mxu3 %vm378_vm1, %v2915_v51  ;;  %3031 = vmatmul.msk.f32.gmra.mxu0 %vm378_vm1, %v2992_v38  ;;  %v3621_v46 = vpop.f32.mrf.mxu2  ;;  %v2852_v6 = vld [vmem:[%s3170_s6 + $0x202] ss:$2 sm:$0xff] }
 0x12d   : > { %v2008_v61 = vmax.f32 %v1970_v5, 0.0  ;;  %v2917_v5 = vld [vmem:[%s3170_s6 + $0x143] ss:$2 sm:$0xff] }
 0x12e   : > { %v1456_v4 = vpop.f32.mrf.mxu3 }
 0x12f   : > { %2047 = vst.msk [vmem:[#allocation2 + $0x8] sm:$0xff] %vm2045_vm2, %v2008_v61  ;;  %v1566_v52 = vadd.f32 %v1456_v4, %v1203_v0  ;;  %v2994_v4 = vld [vmem:[%s3170_s6 + $0x144] ss:$2 sm:$0xff] }
 0x130   : > { %v1822_v18 = vpop.f32.mrf.mxu0 }
 0x131   : > { %v1929_v60 = vadd.f32 %v1819_v43, %v1566_v52  ;;  %v1204_v43 = vadd.f32 %v3477_v40, %v772_v55  ;;  %v775_v52 = vadd.f32 %v3452_v25, %v3359_v34  ;;  %v2231_v40 = vld [vmem:[%s4028_s3 + $0x30] sm:$0xff] }
 0x132   : > { %2890 = vmatmul.msk.f32.gmra.mxu2 %vm378_vm1, %v2851_v33  ;;  %2818 = vmatmul.msk.f32.gmra.mxu1 %vm378_vm1, %v2702_v7 }
 0x133   : > { %v1971_v51 = vadd.f32 %v3574_v63, %v1929_v60  ;;  %2955 = vmatmul.msk.f32.gmra.mxu3 %vm378_vm1, %v2916_v21  ;;  %3032 = vmatmul.msk.f32.gmra.mxu0 %vm378_vm1, %v2993_v14  ;;  %v1205_v21 = vadd.f32 %v3495_v58, %v775_v52  ;;  %v3640_v34 = vpop.f32.mrf.mxu2 }
 0x134   : > { %2264 = vmatpush.msrb.mxu1 %v2231_v40 }
 0x135   : > { %v2009_v38 = vmax.f32 %v1971_v51, 0.0  ;;  %v2853_v51 = vld [vmem:[%s3170_s6 + $0x212] ss:$2 sm:$0xff] }
 0x136   : > { %v1459_v12 = vpop.f32.mrf.mxu3 }
 0x137   : > { %2048 = vst.msk [vmem:[#allocation2 + $0x10] sm:$0xff] %vm2045_vm2, %v2009_v38  ;;  %v1567_v28 = vadd.f32 %v1459_v12, %v1204_v43  ;;  %v2918_v38 = vld [vmem:[%s3170_s6 + $0x153] ss:$2 sm:$0xff]  ;;  %v2230_v12 = vld [vmem:[%s4028_s3 + $0x28] sm:$0xff] }
 0x138   : > { %v1825_v61 = vpop.f32.mrf.mxu0  ;;  %2265 = vmatpush.msrb.mxu1 %v2230_v12 }
 0x139   : > { %v1930_v0 = vadd.f32 %v1822_v18, %v1567_v28 }
 0x13a   : > { %2891 = vmatmul.msk.f32.gmra.mxu2 %vm378_vm1, %v2852_v6 }
 0x13b   : > { %v1972_v33 = vadd.f32 %v3574_v63, %v1930_v0  ;;  %2956 = vmatmul.msk.f32.gmra.mxu3 %vm378_vm1, %v2917_v5  ;;  %3033 = vmatmul.msk.f32.gmra.mxu0 %vm378_vm1, %v2994_v4  ;;  %v2995_v5 = vld [vmem:[%s3170_s6 + $0x154] ss:$2 sm:$0xff]  ;;  %v778_v4 = vadd.f32 %v3475_v39, %v3373_v41 }
 0x13c   : > { %v2229_v0 = vld [vmem:[%s4028_s3 + $0x20] sm:$0xff]  ;;  %v2215_v41 = vld [vmem:[%s4028_s3 + $0x10] sm:$0xff] }
 0x13d   : > { %v2010_v60 = vmax.f32 %v1972_v33, 0.0  ;;  %2266 = vmatpush.msrb.mxu1 %v2229_v0  ;;  %2317 = vmatpush.msrb.mxu2 %v2215_v41 }
 0x13e   : > { %v2085_v25 = vld [vmem:[#allocation2] ss:$3 sm:$0xff]  ;;  %v2111_v7 = vld [vmem:[#allocation2 + $0x1] ss:$3 sm:$0xff]  ;;  %v1462_v18 = vpop.f32.mrf.mxu3  ;;  %v2150_v43 = vld [vmem:[#allocation2 + $0x2] ss:$3 sm:$0xff] }
 0x13f   : > { %v2136_v14 = vmax.f32 %v2085_v25, %v2111_v7  ;;  %2049 = vst.msk [vmem:[#allocation2 + $0x18] sm:$0xff] %vm2045_vm2, %v2010_v60  ;;  %v1568_v55 = vadd.f32 %v1462_v18, %v1205_v21  ;;  %v3664_v21 = vpop.f32.mrf.mxu2  ;;  %v2854_v60 = vld [vmem:[%s3170_s6 + $0x222] ss:$2 sm:$0xff]  ;;  %v2919_v25 = vld [vmem:[%s3170_s6 + $0x163] ss:$2 sm:$0xff] }
 0x140   : > { %v1828_v6 = vpop.f32.mrf.mxu0  ;;  %v2214_v7 = vld [vmem:[%s4028_s3 + $0x8] sm:$0xff] }
 0x141   : > { %v2175_v28 = vmax.f32 %v2136_v14, %v2150_v43  ;;  %v1931_v58 = vadd.f32 %v1825_v61, %v1568_v55  ;;  %v1206_v61 = vadd.f32 %v3517_v27, %v778_v4  ;;  %v2996_v14 = vld [vmem:[%s3170_s6 + $0x164] ss:$2 sm:$0xff]  ;;  %2318 = vmatpush.msrb.mxu2 %v2214_v7  ;;  %v2997_v4 = vld [vmem:[%s3170_s6 + $0x174] ss:$2 sm:$0xff] }
 0x142   : > { %2892 = vmatmul.msk.f32.gmra.mxu2 %vm378_vm1, %v2853_v51  ;;  %v2213_v55 = vld [vmem:[%s4028_s3] sm:$0xff]  ;;  %v781_v51 = vadd.f32 %v3493_v56, %v3389_v49  ;;  %v3685_v49 = vpop.f32.mrf.mxu1 }
 0x143   : > { %2188 = vst.msk [vmem:[#allocation3] sm:$0xff] %vm2045_vm2, %v2175_v28  ;;  %v1973_v52 = vadd.f32 %v3574_v63, %v1931_v58  ;;  %2957 = vmatmul.msk.f32.gmra.mxu3 %vm378_vm1, %v2918_v38  ;;  %3034 = vmatmul.msk.f32.gmra.mxu0 %vm378_vm1, %v2995_v5  ;;  %v2920_v5 = vld [vmem:[%s3170_s6 + $0x173] ss:$2 sm:$0xff] }
 0x144   : > { %2319 = vmatpush.msrb.mxu2 %v2213_v55  ;;  %v1207_v38 = vadd.f32 %v3538_v62, %v781_v51  ;;  %v2998_v51 = vld [vmem:[%s3170_s6 + $0x184] ss:$2 sm:$0xff] }
 0x145   : > { %v2011_v33 = vmax.f32 %v1973_v52, 0.0 }
 0x146   : > { %v1465_v40 = vpop.f32.mrf.mxu3 }
 0x147   : > { %2050 = vst.msk [vmem:[#allocation2 + $0x20] sm:$0xff] %vm2045_vm2, %v2011_v33  ;;  %v1569_v39 = vadd.f32 %v1465_v40, %v1206_v61  ;;  %v3688_v52 = vpop.f32.mrf.mxu2  ;;  %v784_v61 = vadd.f32 %v3511_v15, %v3405_v57  ;;  %v2856_v15 = vld [vmem:[%s3170_s6 + $0x242] ss:$2 sm:$0xff] }
 0x148   : > { %v1831_v27 = vpop.f32.mrf.mxu0 }
 0x149   : > { %v1932_v18 = vadd.f32 %v1828_v6, %v1569_v39  ;;  %v2855_v6 = vld [vmem:[%s3170_s6 + $0x232] ss:$2 sm:$0xff]  ;;  %v1208_v33 = vadd.f32 %v3556_v32, %v784_v61  ;;  %v787_v32 = vadd.f32 %v3534_v54, %v3421_v1 }
 0x14a   : > { %2893 = vmatmul.msk.f32.gmra.mxu2 %vm378_vm1, %v2854_v60  ;;  %v2857_v54 = vld [vmem:[%s3170_s6 + $0x252] ss:$2 sm:$0x3] }
 0x14b   : > { %v1974_v43 = vadd.f32 %v3574_v63, %v1932_v18  ;;  %2958 = vmatmul.msk.f32.gmra.mxu3 %vm378_vm1, %v2919_v25  ;;  %3035 = vmatmul.msk.f32.gmra.mxu0 %vm378_vm1, %v2996_v14  ;;  %v2921_v18 = vld [vmem:[%s3170_s6 + $0x183] ss:$2 sm:$0xff] }
 0x14d   : > { %v2012_v12 = vmax.f32 %v1974_v43, 0.0  ;;  %v3703_v43 = vpop.f32.mrf.mxu1 }
 0x14e   : > { %v1468_v28 = vpop.f32.mrf.mxu3 }
 0x14f   : > { %2051 = vst.msk [vmem:[#allocation2 + $0x28] sm:$0xff] %vm2045_vm2, %v2012_v12  ;;  %v1570_v58 = vadd.f32 %v1468_v28, %v1207_v38  ;;  %v3709_v12 = vpop.f32.mrf.mxu2  ;;  %v1209_v28 = vadd.f32 %v3578_v8, %v787_v32 }
 0x150   : > { %v1834_v0 = vpop.f32.mrf.mxu0 }
 0x151   : > { %v1933_v56 = vadd.f32 %v1831_v27, %v1570_v58 }
 0x152   : > { %2894 = vmatmul.msk.f32.gmra.mxu2 %vm378_vm1, %v2855_v6 }
 0x153   : > { %v1975_v62 = vadd.f32 %v3574_v63, %v1933_v56  ;;  %2959 = vmatmul.msk.f32.gmra.mxu3 %vm378_vm1, %v2920_v5  ;;  %3036 = vmatmul.msk.f32.gmra.mxu0 %vm378_vm1, %v2997_v4  ;;  %v2922_v5 = vld [vmem:[%s3170_s6 + $0x193] ss:$2 sm:$0xff]  ;;  %v2999_v4 = vld [vmem:[%s3170_s6 + $0x194] ss:$2 sm:$0xff] }
 0x155   : > { %v2013_v40 = vmax.f32 %v1975_v62, 0.0  ;;  %v790_v62 = vadd.f32 %v3554_v22, %v3435_v9  ;;  %v2923_v22 = vld [vmem:[%s3170_s6 + $0x1a3] ss:$2 sm:$0xff] }
 0x156   : > { %v2087_v41 = vld [vmem:[#allocation2 + $0x18] ss:$3 sm:$0xff]  ;;  %v2113_v39 = vld [vmem:[#allocation2 + $0x19] ss:$3 sm:$0xff]  ;;  %v1471_v60 = vpop.f32.mrf.mxu3  ;;  %v2152_v57 = vld [vmem:[#allocation2 + $0x1a] ss:$3 sm:$0xff] }
 0x157   : > { %v2137_v25 = vmax.f32 %v2087_v41, %v2113_v39  ;;  %2052 = vst.msk [vmem:[#allocation2 + $0x30] sm:$0xff] %vm2045_vm2, %v2013_v40  ;;  %v1571_v7 = vadd.f32 %v1471_v60, %v1208_v33  ;;  %v1210_v8 = vadd.f32 %v3599_v48, %v790_v62  ;;  %v3725_v40 = vpop.f32.mrf.mxu1  ;;  %v3727_v39 = vpop.f32.mrf.mxu2 }
 0x158   : > { %v1837_v55 = vpop.f32.mrf.mxu0 }
 0x159   : > { %v2176_v27 = vmax.f32 %v2137_v25, %v2152_v57  ;;  %v1934_v14 = vadd.f32 %v1834_v0, %v1571_v7  ;;  %v3000_v57 = vld [vmem:[%s3170_s6 + $0x1a4] ss:$2 sm:$0xff] }
 0x15a   : > { %2895 = vmatmul.msk.f32.gmra.mxu2 %vm378_vm1, %v2856_v15 }
 0x15b   : > { %2189 = vst.msk [vmem:[#allocation3 + $0x8] sm:$0xff] %vm2045_vm2, %v2176_v27  ;;  %v1976_v38 = vadd.f32 %v3574_v63, %v1934_v14  ;;  %2960 = vmatmul.msk.f32.gmra.mxu3 %vm378_vm1, %v2921_v18  ;;  %3037 = vmatmul.msk.f32.gmra.mxu0 %vm378_vm1, %v2998_v51  ;;  %v793_v18 = vadd.f32 %v3576_v31, %v3449_v20 }
 0x15d   : > { %v2014_v58 = vmax.f32 %v1976_v38, 0.0  ;;  %v1211_v27 = vadd.f32 %v3621_v46, %v793_v18  ;;  %v2926_v18 = vld [vmem:[%s3170_s6 + $0x1d3] ss:$2 sm:$0xff] }
 0x15e   : > { %v1474_v6 = vpop.f32.mrf.mxu3 }
 0x15f   : > { %2053 = vst.msk [vmem:[#allocation2 + $0x38] sm:$0xff] %vm2045_vm2, %v2014_v58  ;;  %v1572_v1 = vadd.f32 %v1474_v6, %v1209_v28  ;;  %v3739_v38 = vpop.f32.mrf.mxu1  ;;  %v3742_v31 = vpop.f32.mrf.mxu2  ;;  %v2924_v6 = vld [vmem:[%s3170_s6 + $0x1b3] ss:$2 sm:$0xff] }
 0x160   : > { %v1840_v0 = vpop.f32.mrf.mxu0 }
 0x161   : > { %v1935_v56 = vadd.f32 %v1837_v55, %v1572_v1 }
 0x162   : > { %v2218_v61 = vld [vmem:[#allocation3 + $0x1] ss:$2 sm:$0xff]  ;;  %2896 = vmatmul.msk.f32.gmra.mxu2 %vm378_vm1, %v2857_v54  ;;  %v2202_v15 = vld [vmem:[#allocation3] ss:$2 sm:$0xff] }
 0x163   : > { %v1977_v33 = vadd.f32 %v3574_v63, %v1935_v56  ;;  %2961 = vmatmul.msk.f32.gmra.mxu3 %vm378_vm1, %v2922_v5  ;;  %3051 = vmatmul.msk.f32.vlgmr.msrb.gmra.mxu1 %vm2045_vm2, %v2218_v61  ;;  %v3001_v5 = vld [vmem:[%s3170_s6 + $0x1b4] ss:$2 sm:$0xff]  ;;  %v796_v56 = vadd.f32 %v3597_v42, %v3468_v35 }
 0x164   : > { %3038 = vmatmul.msk.f32.gmra.mxu0 %vm378_vm1, %v2999_v4 }
 0x165   : > { %v2015_v41 = vmax.f32 %v1977_v33, 0.0  ;;  %v1212_v4 = vadd.f32 %v3640_v34, %v796_v56 }
 0x166   : > { %v1477_v60 = vpop.f32.mrf.mxu3 }
 0x167   : > { %2054 = vst.msk [vmem:[#allocation2 + $0x40] sm:$0xff] %vm2045_vm2, %v2015_v41  ;;  %v1573_v9 = vadd.f32 %v1477_v60, %v1210_v8  ;;  %v2925_v8 = vld [vmem:[%s3170_s6 + $0x1c3] ss:$2 sm:$0xff]  ;;  %v3755_v41 = vpop.f32.mrf.mxu1  ;;  %v3002_v60 = vld [vmem:[%s3170_s6 + $0x1c4] ss:$2 sm:$0xff] }
 0x168   : > { %v1843_v7 = vpop.f32.mrf.mxu0 }
 0x169   : > { %v1936_v25 = vadd.f32 %v1840_v0, %v1573_v9  ;;  %v3758_v9 = vpop.f32.mrf.mxu2 }
 0x16a   : > { %3057 = vmatmul.msk.f32.vlgmr.msrb.gmra.mxu2 %vm2045_vm2, %v2202_v15 }
 0x16b   : > { %v1978_v48 = vadd.f32 %v3574_v63, %v1936_v25  ;;  %2962 = vmatmul.msk.f32.gmra.mxu3 %vm378_vm1, %v2923_v22  ;;  %v799_v22 = vadd.f32 %v3619_v26, %v3484_v50  ;;  %v802_v50 = vadd.f32 %v3685_v49, %v3500_v2 }
 0x16c   : > { %3039 = vmatmul.msk.f32.gmra.mxu0 %vm378_vm1, %v3000_v57 }
 0x16d   : > { %v2016_v14 = vmax.f32 %v1978_v48, 0.0  ;;  %v1213_v25 = vadd.f32 %v3664_v21, %v799_v22 }
 0x16e   : > { %v2089_v55 = vld [vmem:[#allocation2 + $0x30] ss:$3 sm:$0xff]  ;;  %v2115_v51 = vld [vmem:[#allocation2 + $0x31] ss:$3 sm:$0xff]  ;;  %v1480_v32 = vpop.f32.mrf.mxu3  ;;  %v2154_v58 = vld [vmem:[#allocation2 + $0x32] ss:$3 sm:$0xff] }
 0x16f   : > { %v2138_v28 = vmax.f32 %v2089_v55, %v2115_v51  ;;  %2055 = vst.msk [vmem:[#allocation2 + $0x48] sm:$0xff] %vm2045_vm2, %v2016_v14  ;;  %v1574_v20 = vadd.f32 %v1480_v32, %v1211_v27  ;;  %v3003_v14 = vld [vmem:[%s3170_s6 + $0x1d4] ss:$2 sm:$0xff]  ;;  %v3771_v26 = vpop.f32.mrf.mxu1  ;;  %v1214_v51 = vadd.f32 %v3688_v52, %v802_v50  ;;  %v3006_v50 = vld [vmem:[%s3170_s6 + $0x204] ss:$2 sm:$0xff] }
 0x170   : > { %v1846_v54 = vpop.f32.mrf.mxu0 }
 0x171   : > { %v1937_v1 = vadd.f32 %v1843_v7, %v1574_v20  ;;  %v2177_v46 = vmax.f32 %v2138_v28, %v2154_v58  ;;  %v3775_v21 = vpop.f32.mrf.mxu2 }
 0x173   : > { %v1979_v0 = vadd.f32 %v3574_v63, %v1937_v1  ;;  %2963 = vmatmul.msk.f32.gmra.mxu3 %vm378_vm1, %v2924_v6  ;;  %2190 = vst.msk [vmem:[#allocation3 + $0x10] sm:$0xff] %vm2045_vm2, %v2177_v46  ;;  %v2927_v1 = vld [vmem:[%s3170_s6 + $0x1e3] ss:$2 sm:$0xff]  ;;  %v3004_v46 = vld [vmem:[%s3170_s6 + $0x1e4] ss:$2 sm:$0xff] }
 0x174   : > { %3040 = vmatmul.msk.f32.gmra.mxu0 %vm378_vm1, %v3001_v5 }
 0x175   : > { %v2017_v61 = vmax.f32 %v1979_v0, 0.0  ;;  %v805_v0 = vadd.f32 %v3703_v43, %v3514_v19  ;;  %v2928_v19 = vld [vmem:[%s3170_s6 + $0x1f3] ss:$2 sm:$0xff] }
 0x176   : > { %v1483_v62 = vpop.f32.mrf.mxu3 }
 0x177   : > { %2056 = vst.msk [vmem:[#allocation2 + $0x50] sm:$0xff] %vm2045_vm2, %v2017_v61  ;;  %v1575_v33 = vadd.f32 %v1483_v62, %v1212_v4  ;;  %v3788_v4 = vpop.f32.mrf.mxu1  ;;  %v1215_v61 = vadd.f32 %v3709_v12, %v805_v0 }
 0x178   : > { %v1849_v42 = vpop.f32.mrf.mxu0 }
 0x179   : > { %v1938_v35 = vadd.f32 %v1846_v54, %v1575_v33  ;;  %v3791_v33 = vpop.f32.mrf.mxu2 }
 0x17b   : > { %v1980_v34 = vadd.f32 %v3574_v63, %v1938_v35  ;;  %2964 = vmatmul.msk.f32.gmra.mxu3 %vm378_vm1, %v2925_v8 }
 0x17c   : > { %3041 = vmatmul.msk.f32.gmra.mxu0 %vm378_vm1, %v3002_v60  ;;  %v3005_v60 = vld [vmem:[%s3170_s6 + $0x1f4] ss:$2 sm:$0xff] }
 0x17d   : > { %v2018_v7 = vmax.f32 %v1980_v34, 0.0 }
 0x17e   : > { %v1486_v57 = vpop.f32.mrf.mxu3 }
 0x17f   : > { %2057 = vst.msk [vmem:[#allocation2 + $0x58] sm:$0xff] %vm2045_vm2, %v2018_v7  ;;  %v1576_v15 = vadd.f32 %v1486_v57, %v1213_v25  ;;  %v808_v25 = vadd.f32 %v3725_v40, %v3531_v47 }
 0x180   : > { %v1852_v27 = vpop.f32.mrf.mxu0 }
 0x181   : > { %v1939_v48 = vadd.f32 %v1849_v42, %v1576_v15  ;;  %v1216_v7 = vadd.f32 %v3727_v39, %v808_v25  ;;  %v3807_v40 = vpop.f32.mrf.mxu2 }
 0x183   : > { %v1981_v55 = vadd.f32 %v3574_v63, %v1939_v48  ;;  %2965 = vmatmul.msk.f32.gmra.mxu3 %vm378_vm1, %v2926_v18  ;;  %v3804_v18 = vpop.f32.mrf.mxu1  ;;  %v2929_v48 = vld [vmem:[%s3170_s6 + $0x203] ss:$2 sm:$0xff] }
 0x184   : > { %3042 = vmatmul.msk.f32.gmra.mxu0 %vm378_vm1, %v3003_v14 }
 0x185   : > { %v2019_v32 = vmax.f32 %v1981_v55, 0.0  ;;  %v811_v55 = vadd.f32 %v3739_v38, %v3547_v11 }
 0x186   : > { %v2091_v28 = vld [vmem:[#allocation2 + $0x48] ss:$3 sm:$0xff]  ;;  %v2117_v20 = vld [vmem:[#allocation2 + $0x49] ss:$3 sm:$0xff]  ;;  %v1489_v58 = vpop.f32.mrf.mxu3  ;;  %v2156_v49 = vld [vmem:[#allocation2 + $0x4a] ss:$3 sm:$0xff] }
 0x187   : > { %v2139_v6 = vmax.f32 %v2091_v28, %v2117_v20  ;;  %2058 = vst.msk [vmem:[#allocation2 + $0x60] sm:$0xff] %vm2045_vm2, %v2019_v32  ;;  %v1577_v2 = vadd.f32 %v1489_v58, %v1214_v51  ;;  %v1217_v39 = vadd.f32 %v3742_v31, %v811_v55  ;;  %v814_v31 = vadd.f32 %v3755_v41, %v3326_v16  ;;  %v3008_v16 = vld [vmem:[%s3170_s6 + $0x224] ss:$2 sm:$0xff] }
 0x188   : > { %v1855_v5 = vpop.f32.mrf.mxu0  ;;  %v817_v41 = vadd.f32 %v3771_v26, %v3342_v24  ;;  %v3009_v26 = vld [vmem:[%s3170_s6 + $0x234] ss:$2 sm:$0xff] }
 0x189   : > { %v1940_v54 = vadd.f32 %v1852_v27, %v1577_v2  ;;  %v2178_v56 = vmax.f32 %v2139_v6, %v2156_v49 }
 0x18b   : > { %v1982_v52 = vadd.f32 %v3574_v63, %v1940_v54  ;;  %2966 = vmatmul.msk.f32.gmra.mxu3 %vm378_vm1, %v2927_v1  ;;  %2191 = vst.msk [vmem:[#allocation3 + $0x18] sm:$0xff] %vm2045_vm2, %v2178_v56  ;;  %v2930_v1 = vld [vmem:[%s3170_s6 + $0x213] ss:$2 sm:$0xff]  ;;  %v3819_v11 = vpop.f32.mrf.mxu1  ;;  %v3822_v56 = vpop.f32.mrf.mxu2 }
 0x18c   : > { %3043 = vmatmul.msk.f32.gmra.mxu0 %vm378_vm1, %v3004_v46 }
 0x18d   : > { %v2020_v62 = vmax.f32 %v1982_v52, 0.0  ;;  %v1218_v52 = vadd.f32 %v3758_v9, %v814_v31  ;;  %v2934_v31 = vld [vmem:[%s3170_s6 + $0x253] ss:$2 sm:$0x3] }
 0x18e   : > { %v1492_v8 = vpop.f32.mrf.mxu3 }
 0x18f   : > { %2059 = vst.msk [vmem:[#allocation2 + $0x68] sm:$0xff] %vm2045_vm2, %v2020_v62  ;;  %v1578_v35 = vadd.f32 %v1492_v8, %v1215_v61 }
 0x190   : > { %v1858_v42 = vpop.f32.mrf.mxu0 }
 0x191   : > { %v1941_v43 = vadd.f32 %v1855_v5, %v1578_v35  ;;  %v3007_v5 = vld [vmem:[%s3170_s6 + $0x214] ss:$2 sm:$0xff]  ;;  %v2931_v35 = vld [vmem:[%s3170_s6 + $0x223] ss:$2 sm:$0xff] }
 0x192   : > { %v2220_v22 = vld [vmem:[#allocation3 + $0x11] ss:$2 sm:$0xff]  ;;  %v2204_v34 = vld [vmem:[#allocation3 + $0x10] ss:$2 sm:$0xff] }
 0x193   : > { %v1983_v12 = vadd.f32 %v3574_v63, %v1941_v43  ;;  %2967 = vmatmul.msk.f32.gmra.mxu3 %vm378_vm1, %v2928_v19  ;;  %3052 = vmatmul.msk.f32.gmra.mxu1 %vm2045_vm2, %v2220_v22  ;;  %v3840_v9 = vpop.f32.mrf.mxu2  ;;  %v1219_v22 = vadd.f32 %v3775_v21, %v817_v41 }
 0x194   : > { %3058 = vmatmul.msk.f32.gmra.mxu2 %vm2045_vm2, %v2204_v34  ;;  %3044 = vmatmul.msk.f32.gmra.mxu0 %vm378_vm1, %v3005_v60 }
 0x195   : > { %v2021_v57 = vmax.f32 %v1983_v12, 0.0 }
 0x196   : > { %v1495_v15 = vpop.f32.mrf.mxu3 }
 0x197   : > { %2060 = vst.msk [vmem:[#allocation2 + $0x70] sm:$0xff] %vm2045_vm2, %v2021_v57  ;;  %v1579_v47 = vadd.f32 %v1495_v15, %v1216_v7  ;;  %v2932_v7 = vld [vmem:[%s3170_s6 + $0x233] ss:$2 sm:$0xff]  ;;  %v820_v15 = vadd.f32 %v3788_v4, %v3362_v36 }
 0x198   : > { %v1861_v14 = vpop.f32.mrf.mxu0 }
 0x199   : > { %v1942_v27 = vadd.f32 %v1858_v42, %v1579_v47  ;;  %v3836_v42 = vpop.f32.mrf.mxu1 }
 0x19b   : > { %v1984_v51 = vadd.f32 %v3574_v63, %v1942_v27  ;;  %2968 = vmatmul.msk.f32.gmra.mxu3 %vm378_vm1, %v2929_v48  ;;  %v1220_v48 = vadd.f32 %v3791_v33, %v820_v15  ;;  %v823_v33 = vadd.f32 %v3804_v18, %v3380_v44  ;;  %v3011_v18 = vld [vmem:[%s3170_s6 + $0x254] ss:$2 sm:$0x3] }
 0x19c   : > { %3045 = vmatmul.msk.f32.gmra.mxu0 %vm378_vm1, %v3006_v50 }
 0x19d   : > { %v2022_v32 = vmax.f32 %v1984_v51, 0.0 }
 0x19e   : > { %v2093_v28 = vld [vmem:[#allocation2 + $0x60] ss:$3 sm:$0xff]  ;;  %v2119_v20 = vld [vmem:[#allocation2 + $0x61] ss:$3 sm:$0xff]  ;;  %v1498_v58 = vpop.f32.mrf.mxu3  ;;  %v2158_v49 = vld [vmem:[#allocation2 + $0x62] ss:$3 sm:$0xff] }
 0x19f   : > { %v2140_v6 = vmax.f32 %v2093_v28, %v2119_v20  ;;  %2061 = vst.msk [vmem:[#allocation2 + $0x78] sm:$0xff] %vm2045_vm2, %v2022_v32  ;;  %v1580_v2 = vadd.f32 %v1498_v58, %v1217_v39  ;;  %v2933_v32 = vld [vmem:[%s3170_s6 + $0x243] ss:$2 sm:$0xff]  ;;  %v3010_v58 = vld [vmem:[%s3170_s6 + $0x244] ss:$2 sm:$0xff] }
 0x1a0   : > { %v1864_v54 = vpop.f32.mrf.mxu0 }
 0x1a1   : > { %v1943_v38 = vadd.f32 %v1861_v14, %v1580_v2  ;;  %v2179_v46 = vmax.f32 %v2140_v6, %v2158_v49  ;;  %v3852_v21 = vpop.f32.mrf.mxu1  ;;  %v3855_v14 = vpop.f32.mrf.mxu2  ;;  %v1221_v49 = vadd.f32 %v3807_v40, %v823_v33 }
 0x1a3   : > { %v1985_v0 = vadd.f32 %v3574_v63, %v1943_v38  ;;  %2969 = vmatmul.msk.f32.gmra.mxu3 %vm378_vm1, %v2930_v1  ;;  %2192 = vst.msk [vmem:[#allocation3 + $0x20] sm:$0xff] %vm2045_vm2, %v2179_v46 }
 0x1a4   : > { %3046 = vmatmul.msk.f32.gmra.mxu0 %vm378_vm1, %v3007_v5 }
 0x1a5   : > { %v2023_v61 = vmax.f32 %v1985_v0, 0.0 }
 0x1a6   : > { %v1501_v62 = vpop.f32.mrf.mxu3 }
 0x1a7   : > { %2062 = vst.msk [vmem:[#allocation2 + $0x80] sm:$0xff] %vm2045_vm2, %v2023_v61  ;;  %v1581_v8 = vadd.f32 %v1501_v62, %v1218_v52  ;;  %v826_v62 = vadd.f32 %v3819_v11, %v3314_v10 }
 0x1a8   : > { %v1867_v43 = vpop.f32.mrf.mxu0 }
 0x1a9   : > { %v1944_v19 = vadd.f32 %v1864_v54, %v1581_v8  ;;  %v834_v54 = vpop.f32.mrf.mxu1  ;;  %v1159_v46 = vpop.f32.mrf.mxu2  ;;  %v1222_v40 = vadd.f32 %v3822_v56, %v826_v62 }
 0x1ab   : > { %v1986_v60 = vadd.f32 %v3574_v63, %v1944_v19  ;;  %2970 = vmatmul.msk.f32.gmra.mxu3 %vm378_vm1, %v2931_v35 }
 0x1ac   : > { %3047 = vmatmul.msk.f32.gmra.mxu0 %vm378_vm1, %v3008_v16 }
 0x1ad   : > { %v2024_v34 = vmax.f32 %v1986_v60, 0.0  ;;  %v829_v60 = vadd.f32 %v3836_v42, %v3328_v17 }
 0x1ae   : > { %v1504_v25 = vpop.f32.mrf.mxu3 }
 0x1af   : > { %2063 = vst.msk [vmem:[#allocation2 + $0x88] sm:$0xff] %vm2045_vm2, %v2024_v34  ;;  %v1582_v12 = vadd.f32 %v1504_v25, %v1219_v22  ;;  %v1223_v34 = vadd.f32 %v3840_v9, %v829_v60 }
 0x1b0   : > { %v1870_v24 = vpop.f32.mrf.mxu0 }
 0x1b1   : > { %v1945_v57 = vadd.f32 %v1867_v43, %v1582_v12  ;;  %v837_v16 = vpop.f32.mrf.mxu1  ;;  %v1162_v11 = vpop.f32.mrf.mxu2 }
 0x1b3   : > { %v1987_v47 = vadd.f32 %v3574_v63, %v1945_v57  ;;  %2971 = vmatmul.msk.f32.gmra.mxu3 %vm378_vm1, %v2932_v7 }
 0x1b4   : > { %3048 = vmatmul.msk.f32.gmra.mxu0 %vm378_vm1, %v3009_v26 }
 0x1b5   : > { %v2025_v27 = vmax.f32 %v1987_v47, 0.0 }
 0x1b6   : > { %v2095_v50 = vld [vmem:[#allocation2 + $0x78] ss:$3 sm:$0xff]  ;;  %v2121_v55 = vld [vmem:[#allocation2 + $0x79] ss:$3 sm:$0xff]  ;;  %v1507_v51 = vpop.f32.mrf.mxu3  ;;  %v2160_v4 = vld [vmem:[#allocation2 + $0x7a] ss:$3 sm:$0xff] }
 0x1b7   : > { %v2141_v39 = vmax.f32 %v2095_v50, %v2121_v55  ;;  %2064 = vst.msk [vmem:[#allocation2 + $0x90] sm:$0xff] %vm2045_vm2, %v2025_v27  ;;  %v1583_v36 = vadd.f32 %v1507_v51, %v1220_v48  ;;  %v832_v27 = vadd.f32 %v3852_v21, %v3340_v23 }
 0x1b8   : > { %v1873_v20 = vpop.f32.mrf.mxu0 }
 0x1b9   : > { %v1946_v28 = vadd.f32 %v1870_v24, %v1583_v36  ;;  %v2180_v6 = vmax.f32 %v2141_v39, %v2160_v4  ;;  %v840_v17 = vpop.f32.mrf.mxu1  ;;  %v1165_v9 = vpop.f32.mrf.mxu2  ;;  %v1224_v50 = vadd.f32 %v3855_v14, %v832_v27 }
 0x1bb   : > { %v1988_v2 = vadd.f32 %v3574_v63, %v1946_v28  ;;  %2972 = vmatmul.msk.f32.gmra.mxu3 %vm378_vm1, %v2933_v32  ;;  %2193 = vst.msk [vmem:[#allocation3 + $0x28] sm:$0xff] %vm2045_vm2, %v2180_v6  ;;  %v835_v32 = vadd.f32 %v834_v54, %v3354_v30 }
 0x1bc   : > { %3049 = vmatmul.msk.f32.gmra.mxu0 %vm378_vm1, %v3010_v58 }
 0x1bd   : > { %v2026_v1 = vmax.f32 %v1988_v2, 0.0  ;;  %v1225_v21 = vadd.f32 %v1159_v46, %v835_v32 }
 0x1be   : > { %v1510_v38 = vpop.f32.mrf.mxu3 }
 0x1bf   : > { %2065 = vst.msk [vmem:[#allocation2 + $0x98] sm:$0xff] %vm2045_vm2, %v2026_v1  ;;  %v1584_v5 = vadd.f32 %v1510_v38, %v1221_v49  ;;  %v838_v49 = vadd.f32 %v837_v16, %v3368_v37 }
 0x1c0   : > { %v1876_v44 = vpop.f32.mrf.mxu0 }
 0x1c1   : > { %v1947_v0 = vadd.f32 %v1873_v20, %v1584_v5  ;;  %v843_v23 = vpop.f32.mrf.mxu1  ;;  %v1168_v58 = vpop.f32.mrf.mxu2  ;;  %v1226_v38 = vadd.f32 %v1162_v11, %v838_v49 }
 0x1c2   : > { %v2222_v52 = vld [vmem:[#allocation3 + $0x21] ss:$2 sm:$0xff]  ;;  %v2206_v61 = vld [vmem:[#allocation3 + $0x20] ss:$2 sm:$0xff] }
 0x1c3   : > { %v1989_v8 = vadd.f32 %v3574_v63, %v1947_v0  ;;  %2973 = vmatmul.msk.f32.gmra.mxu3 %vm378_vm1, %v2934_v31  ;;  %3053 = vmatmul.msk.f32.gmra.mxu1 %vm2045_vm2, %v2222_v52 }
 0x1c4   : > { %3059 = vmatmul.msk.f32.gmra.mxu2 %vm2045_vm2, %v2206_v61  ;;  %3050 = vmatmul.msk.f32.gmra.mxu0 %vm378_vm1, %v3011_v18 }
 0x1c5   : > { %v2027_v35 = vmax.f32 %v1989_v8, 0.0 }
 0x1c6   : > { %v1513_v19 = vpop.f32.mrf.mxu3 }
 0x1c7   : > { %2066 = vst.msk [vmem:[#allocation2 + $0xa0] sm:$0xff] %vm2045_vm2, %v2027_v35  ;;  %v1585_v43 = vadd.f32 %v1513_v19, %v1222_v40  ;;  %v841_v40 = vadd.f32 %v840_v17, %v3384_v45 }
 0x1c8   : > { %v1879_v10 = vpop.f32.mrf.mxu0 }
 0x1c9   : > { %v1948_v41 = vadd.f32 %v1876_v44, %v1585_v43  ;;  %v846_v0 = vpop.f32.mrf.mxu1  ;;  %v1171_v18 = vpop.f32.mrf.mxu2  ;;  %v1227_v35 = vadd.f32 %v1165_v9, %v841_v40 }
 0x1cb   : > { %v1990_v22 = vadd.f32 %v3574_v63, %v1948_v41 }
 0x1cd   : > { %v2028_v25 = vmax.f32 %v1990_v22, 0.0 }
 0x1ce   : > { %v2097_v12 = vld [vmem:[#allocation2 + $0x90] ss:$3 sm:$0xff]  ;;  %v2123_v7 = vld [vmem:[#allocation2 + $0x91] ss:$3 sm:$0xff]  ;;  %v1516_v56 = vpop.f32.mrf.mxu3  ;;  %v2162_v26 = vld [vmem:[#allocation2 + $0x92] ss:$3 sm:$0xff] }
 0x1cf   : > { %v2142_v57 = vmax.f32 %v2097_v12, %v2123_v7  ;;  %2067 = vst.msk [vmem:[#allocation2 + $0xa8] sm:$0xff] %vm2045_vm2, %v2028_v25  ;;  %v1586_v24 = vadd.f32 %v1516_v56, %v1223_v34  ;;  %v844_v25 = vadd.f32 %v843_v23, %v3400_v53 }
 0x1d0   : > { %v1882_v47 = vpop.f32.mrf.mxu0 }
 0x1d1   : > { %v1949_v15 = vadd.f32 %v1879_v10, %v1586_v24  ;;  %v2181_v48 = vmax.f32 %v2142_v57, %v2162_v26  ;;  %v849_v41 = vpop.f32.mrf.mxu1  ;;  %v1174_v60 = vpop.f32.mrf.mxu2  ;;  %v1228_v12 = vadd.f32 %v1168_v58, %v844_v25 }
 0x1d3   : > { %v1991_v42 = vadd.f32 %v3574_v63, %v1949_v15  ;;  %2194 = vst.msk [vmem:[#allocation3 + $0x30] sm:$0xff] %vm2045_vm2, %v2181_v48  ;;  %v847_v15 = vadd.f32 %v846_v0, %v3412_v59 }
 0x1d5   : > { %v2029_v55 = vmax.f32 %v1991_v42, 0.0  ;;  %v1229_v27 = vadd.f32 %v1171_v18, %v847_v15  ;;  %v4039_v15 = vld [vmem:[#allocation7_spill] sm:$0xff] }
 0x1d6   : > { %v1519_v51 = vpop.f32.mrf.mxu3 }
 0x1d7   : > { %2068 = vst.msk [vmem:[#allocation2 + $0xb0] sm:$0xff] %vm2045_vm2, %v2029_v55  ;;  %v1587_v39 = vadd.f32 %v1519_v51, %v1224_v50 }
 0x1d8   : > { %v1885_v4 = vpop.f32.mrf.mxu0 }
 0x1d9   : > { %v1950_v36 = vadd.f32 %v1882_v47, %v1587_v39  ;;  %v852_v47 = vpop.f32.mrf.mxu1  ;;  %v1177_v53 = vpop.f32.mrf.mxu2 }
 0x1da   : > { %v853_v49 = vadd.f32 %v852_v47, %v3444_v13  ;;  %v3922_v13 = vld [vmem:[%s4027_s2] ss:$0 sm:$0xff] }
 0x1db   : > { %v1992_v28 = vadd.f32 %v3574_v63, %v1950_v36 }
 0x1dd   : > { %v2030_v20 = vmax.f32 %v1992_v28, 0.0  ;;  %v850_v28 = vadd.f32 %v849_v41, %v3428_v3 }
 0x1de   : > { %v1522_v6 = vpop.f32.mrf.mxu3 }
 0x1df   : > { %2069 = vst.msk [vmem:[#allocation2 + $0xb8] sm:$0xff] %vm2045_vm2, %v2030_v20  ;;  %v1588_v33 = vadd.f32 %v1522_v6, %v1225_v21  ;;  %v1230_v21 = vadd.f32 %v1174_v60, %v850_v28  ;;  %v4038_v60 = vld [vmem:[#allocation6_spill] sm:$0xff] }
 0x1e1   : > { %v1951_v14 = vadd.f32 %v1885_v4, %v1588_v33  ;;  %v1888_v2 = vpop.f32.mrf.mxu0  ;;  %v855_v23 = vpop.f32.mrf.mxu1 }
 0x1e2   : > { %v1180_v58 = vpop.f32.mrf.mxu2  ;;  %v856_v18 = vadd.f32 %v855_v23, %v3463_v29  ;;  %v2353_v29 = vld [vmem:[%s4028_s3 + $0x50] sm:$0xff] }
 0x1e3   : > { %v1993_v1 = vadd.f32 %v3574_v63, %v1951_v14 }
 0x1e5   : > { %v2031_v5 = vmax.f32 %v1993_v1, 0.0 }
 0x1e6   : > { %v2099_v31 = vld [vmem:[#allocation2 + $0xa8] ss:$3 sm:$0xff]  ;;  %v2125_v30 = vld [vmem:[#allocation2 + $0xa9] ss:$3 sm:$0xff]  ;;  %v1525_v54 = vpop.f32.mrf.mxu3  ;;  %v2164_v52 = vld [vmem:[#allocation2 + $0xaa] ss:$3 sm:$0xff] }
 0x1e7   : > { %v2143_v44 = vmax.f32 %v2099_v31, %v2125_v30  ;;  %2070 = vst.msk [vmem:[#allocation2 + $0xc0] sm:$0xff] %vm2045_vm2, %v2031_v5  ;;  %v1589_v46 = vadd.f32 %v1525_v54, %v1226_v38  ;;  %v1231_v38 = vadd.f32 %v1177_v53, %v853_v49  ;;  %v2354_v54 = vld [vmem:[%s4028_s3 + $0x58] sm:$0xff] }
 0x1e8   : > { %2385 = vmatpush.msra.mxu1 %v2354_v54 }
 0x1e9   : > { %v1952_v61 = vadd.f32 %v1888_v2, %v1589_v46  ;;  %v1891_v62 = vpop.f32.mrf.mxu0  ;;  %v2182_v8 = vmax.f32 %v2143_v44, %v2164_v52  ;;  %v858_v31 = vpop.f32.mrf.mxu1  ;;  %v1232_v52 = vadd.f32 %v1180_v58, %v856_v18  ;;  %v2503_v18 = vld [vmem:[%s4028_s3 + $0x90] sm:$0xff] }
 0x1ea   : > { %v1183_v0 = vpop.f32.mrf.mxu2  ;;  %2386 = vmatpush.msra.mxu1 %v2353_v29 }
 0x1eb   : > { %v1994_v37 = vadd.f32 %v3574_v63, %v1952_v61  ;;  %2195 = vst.msk [vmem:[#allocation3 + $0x38] sm:$0xff] %vm2045_vm2, %v2182_v8 }
 0x1ed   : > { %v2032_v19 = vmax.f32 %v1994_v37, 0.0 }
 0x1ee   : > { %v1528_v43 = vpop.f32.mrf.mxu3 }
 0x1ef   : > { %2071 = vst.msk [vmem:[#allocation2 + $0xc8] sm:$0xff] %vm2045_vm2, %v2032_v19  ;;  %v1590_v16 = vadd.f32 %v1528_v43, %v1227_v35 }
 0x1f1   : > { %v1953_v10 = vadd.f32 %v1891_v62, %v1590_v16  ;;  %v1894_v11 = vpop.f32.mrf.mxu0  ;;  %v861_v43 = vpop.f32.mrf.mxu1 }
 0x1f2   : > { %v2224_v22 = vld [vmem:[#allocation3 + $0x31] ss:$2 sm:$0xff]  ;;  %v2208_v34 = vld [vmem:[#allocation3 + $0x30] ss:$2 sm:$0xff]  ;;  %v862_v47 = vadd.f32 %v861_v43, %v4039_v15 }
 0x1f3   : > { %v1995_v45 = vadd.f32 %v3574_v63, %v1953_v10  ;;  %3054 = vmatmul.msk.f32.gmra.mxu1 %vm2045_vm2, %v2224_v22  ;;  %3060 = vmatmul.msk.f32.gmra.mxu2 %vm2045_vm2, %v2208_v34  ;;  %v859_v22 = vadd.f32 %v858_v31, %v4038_v60 }
 0x1f5   : > { %v2033_v7 = vmax.f32 %v1995_v45, 0.0  ;;  %v1233_v25 = vadd.f32 %v1183_v0, %v859_v22 }
 0x1f6   : > { %v1531_v56 = vpop.f32.mrf.mxu3 }
 0x1f7   : > { %2072 = vst.msk [vmem:[#allocation2 + $0xd0] sm:$0xff] %vm2045_vm2, %v2033_v7  ;;  %v1591_v57 = vadd.f32 %v1531_v56, %v1228_v12 }
 0x1f9   : > { %v1954_v24 = vadd.f32 %v1894_v11, %v1591_v57  ;;  %v1897_v26 = vpop.f32.mrf.mxu0  ;;  %v1186_v11 = vpop.f32.mrf.mxu2 }
 0x1fb   : > { %v1996_v48 = vadd.f32 %v3574_v63, %v1954_v24 }
 0x1fd   : > { %v2034_v17 = vmax.f32 %v1996_v48, 0.0  ;;  %v864_v48 = vpop.f32.mrf.mxu1 }
 0x1fe   : > { %v2101_v42 = vld [vmem:[#allocation2 + $0xc0] ss:$3 sm:$0xff]  ;;  %v2127_v9 = vld [vmem:[#allocation2 + $0xc1] ss:$3 sm:$0xff]  ;;  %v1534_v50 = vpop.f32.mrf.mxu3  ;;  %v2166_v39 = vld [vmem:[#allocation2 + $0xc2] ss:$3 sm:$0xff] }
 0x1ff   : > { %v2144_v55 = vmax.f32 %v2101_v42, %v2127_v9  ;;  %2073 = vst.msk [vmem:[#allocation2 + $0xd8] sm:$0xff] %vm2045_vm2, %v2034_v17  ;;  %v1592_v51 = vadd.f32 %v1534_v50, %v1229_v27  ;;  %v1234_v17 = vadd.f32 %v1186_v11, %v862_v47 }
 0x201   : > { %v1955_v36 = vadd.f32 %v1897_v26, %v1592_v51  ;;  %v1900_v4 = vpop.f32.mrf.mxu0  ;;  %v2183_v32 = vmax.f32 %v2144_v55, %v2166_v39  ;;  %v1189_v27 = vpop.f32.mrf.mxu2  ;;  %v4040_v39 = vld [vmem:[#allocation8_spill] sm:$0xff] }
 0x203   : > { %v1997_v59 = vadd.f32 %v3574_v63, %v1955_v36  ;;  %2196 = vst.msk [vmem:[#allocation3 + $0x40] sm:$0xff] %vm2045_vm2, %v2183_v32  ;;  %v865_v36 = vadd.f32 %v864_v48, %v4040_v39 }
 0x205   : > { %v2035_v20 = vmax.f32 %v1997_v59, 0.0  ;;  %v867_v32 = vpop.f32.mrf.mxu1  ;;  %v1235_v28 = vadd.f32 %v1189_v27, %v865_v36 }
 0x206   : > { %v1537_v6 = vpop.f32.mrf.mxu3 }
 0x207   : > { %2074 = vst.msk [vmem:[#allocation2 + $0xe0] sm:$0xff] %vm2045_vm2, %v2035_v20  ;;  %v1593_v33 = vadd.f32 %v1537_v6, %v1230_v21 }
 0x209   : > { %v1956_v14 = vadd.f32 %v1900_v4, %v1593_v33  ;;  %v1903_v2 = vpop.f32.mrf.mxu0  ;;  %v1192_v23 = vpop.f32.mrf.mxu2 }
 0x20b   : > { %v1998_v1 = vadd.f32 %v3574_v63, %v1956_v14  ;;  %v2352_v14 = vld [vmem:[%s4028_s3 + $0x48] sm:$0xff] }
 0x20c   : > { %2387 = vmatpush.msra.mxu1 %v2352_v14  ;;  %v2346_v14 = vld [vmem:[#allocation3 + $0x32] ss:$2 sm:$0xff] }
 0x20d   : > { %v2036_v3 = vmax.f32 %v1998_v1, 0.0 }
 0x20e   : > { %v1540_v5 = vpop.f32.mrf.mxu3 }
 0x20f   : > { %2075 = vst.msk [vmem:[#allocation2 + $0xe8] sm:$0xff] %vm2045_vm2, %v2036_v3  ;;  %v1594_v30 = vadd.f32 %v1540_v5, %v1231_v38  ;;  %v4041_v3 = vld [vmem:[#allocation9_spill] sm:$0xff] }
 0x210   : > { %v868_v5 = vadd.f32 %v867_v32, %v4041_v3 }
 0x211   : > { %v1957_v44 = vadd.f32 %v1903_v2, %v1594_v30  ;;  %v1906_v46 = vpop.f32.mrf.mxu0  ;;  %v2504_v30 = vld [vmem:[%s4028_s3 + $0x98] sm:$0xff] }
 0x212   : > { %v1236_v54 = vadd.f32 %v1192_v23, %v868_v5  ;;  %2535 = vmatpush.msra.mxu2 %v2504_v30  ;;  %v2490_v23 = vld [vmem:[#allocation3 + $0x4] ss:$2 sm:$0xff]  ;;  %v2415_v5 = vld [vmem:[#allocation3 + $0x3] ss:$2 sm:$0xff] }
 0x213   : > { %v1999_v63 = vadd.f32 %v3922_v13, %v1957_v44  ;;  %v2419_v30 = vld [vmem:[#allocation3 + $0x23] ss:$2 sm:$0xff] }
 0x214   : > { %2536 = vmatpush.msra.mxu2 %v2503_v18 }
 0x215   : > { %v2037_v61 = vmax.f32 %v1999_v63, 0.0  ;;  %v2502_v63 = vld [vmem:[%s4028_s3 + $0x88] sm:$0xff] }
 0x216   : > { %v2103_v62 = vld [vmem:[#allocation2 + $0xd8] ss:$3 sm:$0xff]  ;;  %v2129_v8 = vld [vmem:[#allocation2 + $0xd9] ss:$3 sm:$0xff]  ;;  %v1543_v40 = vpop.f32.mrf.mxu3  ;;  %v2168_v19 = vld [vmem:[#allocation2 + $0xda] ss:$3 sm:$0xff]  ;;  %2537 = vmatpush.msra.mxu2 %v2502_v63 }
 0x217   : > { %v2145_v37 = vmax.f32 %v2103_v62, %v2129_v8  ;;  %2076 = vst.msk [vmem:[#allocation2 + $0xf0] sm:$0xff] %vm2045_vm2, %v2037_v61  ;;  %v1595_v35 = vadd.f32 %v1543_v40, %v1232_v52  ;;  %v870_v61 = vpop.f32.mrf.mxu1  ;;  %v1195_v62 = vpop.f32.mrf.mxu2  ;;  %v2501_v8 = vld [vmem:[%s4028_s3 + $0x80] sm:$0xff] }
 0x218   : > { %2538 = vmatpush.msra.mxu2 %v2501_v8 }
 0x219   : > { %v1958_v16 = vadd.f32 %v1906_v46, %v1595_v35  ;;  %v1909_v41 = vpop.f32.mrf.mxu0  ;;  %v2184_v10 = vmax.f32 %v2145_v37, %v2168_v19  ;;  %v2351_v46 = vld [vmem:[%s4028_s3 + $0x40] sm:$0xff]  ;;  %v4042_v37 = vld [vmem:[#allocation10_spill] sm:$0xff]  ;;  %v2429_v19 = vld [vmem:[%s4028_s3 + $0x78] sm:$0xff] }
 0x21a   : > { %2388 = vmatpush.msra.mxu1 %v2351_v46  ;;  %v871_v35 = vadd.f32 %v870_v61, %v4042_v37 }
 0x21b   : > { %v2000_v34 = vadd.f32 %v3922_v13, %v1958_v16  ;;  %2197 = vst.msk [vmem:[#allocation3 + $0x48] sm:$0xff] %vm2045_vm2, %v2184_v10 }
 0x21c   : > { %2460 = vmatpush.msrb.mxu1 %v2429_v19  ;;  %v1237_v16 = vadd.f32 %v1195_v62, %v871_v35 }
 0x21d   : > { %v2038_v45 = vmax.f32 %v2000_v34, 0.0  ;;  %v4043_v34 = vld [vmem:[#allocation11_spill] sm:$0xff] }
 0x21e   : > { %v1546_v12 = vpop.f32.mrf.mxu3 }
 0x21f   : > { %2077 = vst.msk [vmem:[#allocation2 + $0xf8] sm:$0xff] %vm2045_vm2, %v2038_v45  ;;  %v1596_v7 = vadd.f32 %v1546_v12, %v1233_v25  ;;  %v1198_v22 = vpop.f32.mrf.mxu2  ;;  %v4044_v25 = vld [vmem:[#allocation5_spill] sm:$0xff] }
 0x220   : > { %v874_v45 = vadd.f32 %v4044_v25, %v4043_v34 }
 0x221   : > { %v1959_v56 = vadd.f32 %v1909_v41, %v1596_v7  ;;  %v1912_v57 = vpop.f32.mrf.mxu0  ;;  %v2428_v7 = vld [vmem:[%s4028_s3 + $0x70] sm:$0xff] }
 0x222   : > { %v2226_v24 = vld [vmem:[#allocation3 + $0x41] ss:$2 sm:$0xff]  ;;  %v2210_v26 = vld [vmem:[#allocation3 + $0x40] ss:$2 sm:$0xff]  ;;  %2461 = vmatpush.msrb.mxu1 %v2428_v7  ;;  %v3097_v7 = vld [vmem:[%s4029_s4] ss:$0 sm:$0xff] }
 0x223   : > { %v2001_v53 = vadd.f32 %v3922_v13, %v1959_v56  ;;  %3055 = vmatmul.msk.f32.gmra.mxu1 %vm2045_vm2, %v2226_v24  ;;  %3061 = vmatmul.msk.f32.gmra.mxu2 %vm2045_vm2, %v2210_v26  ;;  %v1238_v56 = vadd.f32 %v1198_v22, %v874_v45 }
 0x225   : > { %v2039_v42 = vmax.f32 %v2001_v53, 0.0 }
 0x226   : > { %v1549_v9 = vpop.f32.mrf.mxu3 }
 0x227   : > { %2078 = vst.msk [vmem:[#allocation2 + $0x100] sm:$0xff] %vm2045_vm2, %v2039_v42  ;;  %v1597_v50 = vadd.f32 %v1549_v9, %v1234_v17  ;;  %v2321_v62 = vpop.f32.mrf.mxu2 }
 0x229   : > { %v1960_v55 = vadd.f32 %v1912_v57, %v1597_v50  ;;  %v1915_v51 = vpop.f32.mrf.mxu0 }
 0x22b   : > { %v2002_v4 = vadd.f32 %v3922_v13, %v1960_v55 }
 0x22d   : > { %v2040_v59 = vmax.f32 %v2002_v4, 0.0  ;;  %v2427_v4 = vld [vmem:[%s4028_s3 + $0x68] sm:$0xff] }
 0x22e   : > { %v2105_v21 = vld [vmem:[#allocation2 + $0xf0] ss:$3 sm:$0xff]  ;;  %v2131_v20 = vld [vmem:[#allocation2 + $0xf1] ss:$3 sm:$0xff]  ;;  %v1552_v58 = vpop.f32.mrf.mxu3  ;;  %v2170_v2 = vld [vmem:[#allocation2 + $0xf2] ss:$3 sm:$0xff]  ;;  %2462 = vmatpush.msrb.mxu1 %v2427_v4 }
 0x22f   : > { %v2146_v6 = vmax.f32 %v2105_v21, %v2131_v20  ;;  %2079 = vst.msk [vmem:[#allocation2 + $0x108] sm:$0xff] %vm2045_vm2, %v2040_v59  ;;  %v1598_v33 = vadd.f32 %v1552_v58, %v1235_v28  ;;  %v2340_v59 = vld [vmem:[#allocation3 + $0x2] ss:$2 sm:$0xff]  ;;  %v2342_v20 = vld [vmem:[#allocation3 + $0x12] ss:$2 sm:$0xff] }
 0x230   : > { %v2426_v21 = vld [vmem:[%s4028_s3 + $0x60] sm:$0xff] }
 0x231   : > { %v1961_v49 = vadd.f32 %v1915_v51, %v1598_v33  ;;  %v2185_v1 = vmax.f32 %v2146_v6, %v2170_v2  ;;  %v1918_v38 = vpop.f32.mrf.mxu0  ;;  %2463 = vmatpush.msrb.mxu1 %v2426_v21  ;;  %v2492_v58 = vld [vmem:[#allocation3 + $0x14] ss:$2 sm:$0xff]  ;;  %v2494_v33 = vld [vmem:[#allocation3 + $0x24] ss:$2 sm:$0xff] }
 0x232   : > { %v2344_v6 = vld [vmem:[#allocation3 + $0x22] ss:$2 sm:$0xff] }
 0x233   : > { %v2003_v31 = vadd.f32 %v3922_v13, %v1961_v49  ;;  %2198 = vst.msk [vmem:[#allocation3 + $0x50] sm:$0xff] %vm2045_vm2, %v2185_v1  ;;  %v2496_v2 = vld [vmem:[#allocation3 + $0x34] ss:$2 sm:$0xff] }
 0x235   : > { %v2041_v0 = vmax.f32 %v2003_v31, 0.0  ;;  %v2417_v31 = vld [vmem:[#allocation3 + $0x13] ss:$2 sm:$0xff] }
 0x236   : > { %v1555_v44 = vpop.f32.mrf.mxu3 }
 0x237   : > { %2080 = vst.msk [vmem:[#allocation2 + $0x110] sm:$0xff] %vm2045_vm2, %v2041_v0  ;;  %v1599_v52 = vadd.f32 %v1555_v44, %v1236_v54  ;;  %v2421_v54 = vld [vmem:[#allocation3 + $0x33] ss:$2 sm:$0xff]  ;;  %v2268_v0 = vpop.f32.mrf.mxu1 }
 0x238   : > { %v2322_v34 = vadd.f32 %v2321_v62, %v2268_v0 }
 0x239   : > { %v1962_v40 = vadd.f32 %v1918_v38, %v1599_v52  ;;  %v1921_v43 = vpop.f32.mrf.mxu0 }
 0x23a   : > { %v2348_v49 = vld [vmem:[#allocation3 + $0x42] ss:$2 sm:$0xff]  ;;  %v2423_v44 = vld [vmem:[#allocation3 + $0x43] ss:$2 sm:$0xff] }
 0x23b   : > { %v2004_v29 = vadd.f32 %v3922_v13, %v1962_v40  ;;  %v2498_v1 = vld [vmem:[#allocation3 + $0x44] ss:$2 sm:$0xff]  ;;  %v2324_v40 = vpop.f32.mrf.mxu2 }
 0x23d   : > { %v2042_v41 = vmax.f32 %v2004_v29, 0.0 }
 0x23e   : > { %v1558_v10 = vpop.f32.mrf.mxu3 }
 0x23f   : > { %2081 = vst.msk [vmem:[#allocation2 + $0x118] sm:$0xff] %vm2045_vm2, %v2042_v41  ;;  %v1600_v11 = vadd.f32 %v1558_v10, %v1237_v16  ;;  %v2271_v46 = vpop.f32.mrf.mxu1 }
 0x241   : > { %v1963_v60 = vadd.f32 %v1921_v43, %v1600_v11  ;;  %v1924_v47 = vpop.f32.mrf.mxu0 }
 0x243   : > { %v2005_v12 = vadd.f32 %v3922_v13, %v1963_v60 }
 0x245   : > { %v2043_v57 = vmax.f32 %v2005_v12, 0.0 }
 0x246   : > { %v2107_v24 = vld [vmem:[#allocation2 + $0x108] ss:$3 sm:$0xff]  ;;  %v2133_v26 = vld [vmem:[#allocation2 + $0x109] ss:$3 sm:$0xff]  ;;  %v1561_v15 = vpop.f32.mrf.mxu3  ;;  %v2172_v27 = vld [vmem:[#allocation2 + $0x10a] ss:$3 sm:$0xff] }
 0x247   : > { %v2147_v48 = vmax.f32 %v2107_v24, %v2133_v26  ;;  %2082 = vst.msk [vmem:[#allocation2 + $0x120] sm:$0xff] %vm2045_vm2, %v2043_v57  ;;  %v1601_v53 = vadd.f32 %v1561_v15, %v1238_v56  ;;  %v2274_v63 = vpop.f32.mrf.mxu1  ;;  %v2327_v35 = vpop.f32.mrf.mxu2  ;;  %v2325_v24 = vadd.f32 %v2324_v40, %v2271_v46 }
 0x249   : > { %v1964_v17 = vadd.f32 %v1924_v47, %v1601_v53  ;;  %v2186_v42 = vmax.f32 %v2147_v48, %v2172_v27 }
 0x24b   : > { %v2006_v9 = vadd.f32 %v3922_v13, %v1964_v17  ;;  %2199 = vst.msk [vmem:[#allocation3 + $0x58] sm:$0xff] %vm2045_vm2, %v2186_v42  ;;  %v2328_v42 = vadd.f32 %v2327_v35, %v2274_v63 }
 0x24d   : > { %v2044_v50 = vmax.f32 %v2006_v9, 0.0 }
 0x24e   : > { %v2109_v55 = vld [vmem:[#allocation2 + $0x120] ss:$3 sm:$0x7]  ;;  %v2135_v51 = vld [vmem:[#allocation2 + $0x121] ss:$3 sm:$0x7] }
 0x24f   : > { %2084 = vst.msk [vmem:[#allocation2 + $0x128] sm:$0x3] %vm2083_vm3, %v2044_v50  ;;  %v2148_v32 = vmax.f32 %v2109_v55, %v2135_v51 }
 0x252   : > { %v2228_v39 = vld [vmem:[#allocation3 + $0x51] ss:$2 sm:$0xff]  ;;  %v2212_v36 = vld [vmem:[#allocation3 + $0x50] ss:$2 sm:$0xff] }
 0x253   : > { %3056 = vmatmul.msk.f32.gmra.mxu1 %vm2045_vm2, %v2228_v39  ;;  %3062 = vmatmul.msk.f32.gmra.mxu2 %vm2045_vm2, %v2212_v36 }
 0x256   : > { %v2174_v13 = vld [vmem:[#allocation2 + $0x122] ss:$3 sm:$0x7] }
 0x257   : > { %v2187_v28 = vmax.f32 %v2148_v32, %v2174_v13 }
 0x259   : > { %2201 = vst.msk [vmem:[#allocation3 + $0x60] sm:$0x7] %vm2200_vm4, %v2187_v28 }
 0x25b   : > { %3063 = vmatmul.msk.f32.vlgmr.msra.gmra.mxu1 %vm2045_vm2, %v2340_v59  ;;  %3075 = vmatmul.msk.f32.vlgmr.msra.gmra.mxu2 %vm2045_vm2, %v2490_v23 }
 0x260   : > { %v2350_v38 = vld [vmem:[#allocation3 + $0x52] ss:$2 sm:$0xff]  ;;  %v2425_v18 = vld [vmem:[#allocation3 + $0x53] ss:$2 sm:$0xff] }
 0x261   : > { %v2500_v3 = vld [vmem:[#allocation3 + $0x54] ss:$2 sm:$0xff] }
 0x263   : > { %3064 = vmatmul.msk.f32.gmra.mxu1 %vm2045_vm2, %v2342_v20  ;;  %3076 = vmatmul.msk.f32.gmra.mxu2 %vm2045_vm2, %v2492_v58 }
 0x26b   : > { %3065 = vmatmul.msk.f32.gmra.mxu1 %vm2045_vm2, %v2344_v6  ;;  %3077 = vmatmul.msk.f32.gmra.mxu2 %vm2045_vm2, %v2494_v33 }
 0x270   : > { %v2277_v52 = vpop.f32.mrf.mxu1 }
 0x273   : > { %3066 = vmatmul.msk.f32.gmra.mxu1 %vm2045_vm2, %v2346_v14  ;;  %3078 = vmatmul.msk.f32.gmra.mxu2 %vm2045_vm2, %v2496_v2 }
 0x276   : > { %v2330_v19 = vpop.f32.mrf.mxu2 }
 0x277   : > { %v2331_v4 = vadd.f32 %v2330_v19, %v2277_v52 }
 0x27b   : > { %3067 = vmatmul.msk.f32.gmra.mxu1 %vm2045_vm2, %v2348_v49  ;;  %3079 = vmatmul.msk.f32.gmra.mxu2 %vm2045_vm2, %v2498_v1 }
 0x283   : > { %3068 = vmatmul.msk.f32.gmra.mxu1 %vm2045_vm2, %v2350_v38  ;;  %3080 = vmatmul.msk.f32.gmra.mxu2 %vm2045_vm2, %v2500_v3 }
 0x28b   : > { %3069 = vmatmul.msk.f32.vlgmr.msrb.gmra.mxu1 %vm2045_vm2, %v2415_v5 }
 0x293   : > { %3070 = vmatmul.msk.f32.gmra.mxu1 %vm2045_vm2, %v2417_v31 }
 0x29b   : > { %3071 = vmatmul.msk.f32.gmra.mxu1 %vm2045_vm2, %v2419_v30 }
 0x2a0   : > { %v2280_v61 = vpop.f32.mrf.mxu1 }
 0x2a3   : > { %3072 = vmatmul.msk.f32.gmra.mxu1 %vm2045_vm2, %v2421_v54 }
 0x2a6   : > { %v2333_v16 = vpop.f32.mrf.mxu2 }
 0x2a7   : > { %v2334_v58 = vadd.f32 %v2333_v16, %v2280_v61 }
 0x2ab   : > { %3073 = vmatmul.msk.f32.gmra.mxu1 %vm2045_vm2, %v2423_v44 }
 0x2b3   : > { %3074 = vmatmul.msk.f32.gmra.mxu1 %vm2045_vm2, %v2425_v18 }
 0x2d0   : > { %v4004_v8 = vpop.f32.mrf.mxu1 }
 0x2d6   : > { %v2336_v10 = vpop.f32.mrf.mxu2 }
 0x2d7   : > { %v2337_v0 = vadd.f32 %v2336_v10, %v4004_v8 }
 0x2d8   : > { %v2390_v37 = vpop.f32.mrf.mxu1 }
 0x2d9   : > { %v2408_v25 = vadd.f32 %v2390_v37, %v2322_v34 }
 0x2de   : > { %v2540_v60 = vpop.f32.mrf.mxu2 }
 0x2e0   : > { %v2393_v29 = vpop.f32.mrf.mxu1 }
 0x2e1   : > { %v2409_v15 = vadd.f32 %v2393_v29, %v2325_v24 }
 0x2e6   : > { %v2543_v56 = vpop.f32.mrf.mxu2 }
 0x2e8   : > { %v2396_v43 = vpop.f32.mrf.mxu1 }
 0x2e9   : > { %v2410_v50 = vadd.f32 %v2396_v43, %v2328_v42 }
 0x2ee   : > { %v2546_v17 = vpop.f32.mrf.mxu2 }
 0x2f0   : > { %v2399_v41 = vpop.f32.mrf.mxu1 }
 0x2f1   : > { %v2411_v28 = vadd.f32 %v2399_v41, %v2331_v4 }
 0x2f6   : > { %v2549_v13 = vpop.f32.mrf.mxu2 }
 0x2f8   : > { %v2402_v11 = vpop.f32.mrf.mxu1 }
 0x2f9   : > { %v2412_v33 = vadd.f32 %v2402_v11, %v2334_v58 }
 0x2fe   : > { %v2552_v2 = vpop.f32.mrf.mxu2 }
 0x300   : > { %v2405_v22 = vpop.f32.mrf.mxu1 }
 0x301   : > { %v2413_v46 = vadd.f32 %v2405_v22, %v2337_v0 }
 0x306   : > { %v2555_v61 = vpop.f32.mrf.mxu2 }
 0x308   : > { %v2465_v45 = vpop.f32.mrf.mxu1 }
 0x309   : > { %v2483_v12 = vadd.f32 %v2465_v45, %v2408_v25 }
 0x30b   : > { %v2558_v57 = vadd.f32 %v2540_v60, %v2483_v12 }
 0x30d   : > { %v2568_v26 = vadd.f32 %v3097_v7, %v2558_v57 }
 0x30f   : > { %v2574_v47 = vmax.f32 %v2568_v26, 0.0 }
 0x310   : > { %v2468_v48 = vpop.f32.mrf.mxu1 }
 0x311   : > { %2581 = vst.msk [vmem:[#allocation4] sm:$0xff] %vm2580_vm5, %v2574_v47  ;;  %v2484_v53 = vadd.f32 %v2468_v48, %v2409_v15 }
 0x313   : > { %v2559_v27 = vadd.f32 %v2543_v56, %v2484_v53 }
 0x315   : > { %v2569_v9 = vadd.f32 %v3097_v7, %v2559_v27 }
 0x317   : > { %v2575_v55 = vmax.f32 %v2569_v9, 0.0 }
 0x318   : > { %v2471_v51 = vpop.f32.mrf.mxu1 }
 0x319   : > { %2582 = vst.msk [vmem:[#allocation4 + $0x8] sm:$0xff] %vm2580_vm5, %v2575_v55  ;;  %v2485_v39 = vadd.f32 %v2471_v51, %v2410_v50 }
 0x31b   : > { %v2560_v36 = vadd.f32 %v2546_v17, %v2485_v39 }
 0x31d   : > { %v2570_v32 = vadd.f32 %v3097_v7, %v2560_v36 }
 0x31f   : > { %v2576_v59 = vmax.f32 %v2570_v32, 0.0 }
 0x320   : > { %v2474_v23 = vpop.f32.mrf.mxu1 }
 0x321   : > { %2583 = vst.msk [vmem:[#allocation4 + $0x10] sm:$0xff] %vm2580_vm5, %v2576_v59  ;;  %v2486_v21 = vadd.f32 %v2474_v23, %v2411_v28 }
 0x323   : > { %v2561_v20 = vadd.f32 %v2549_v13, %v2486_v21 }
 0x325   : > { %v2571_v6 = vadd.f32 %v3097_v7, %v2561_v20 }
 0x327   : > { %v2577_v14 = vmax.f32 %v2571_v6, 0.0 }
 0x328   : > { %v2587_v49 = vld [vmem:[#allocation4] ss:$3 sm:$0xff]  ;;  %v2591_v1 = vld [vmem:[#allocation4 + $0x1] ss:$3 sm:$0xff]  ;;  %v2477_v38 = vpop.f32.mrf.mxu1  ;;  %v2597_v31 = vld [vmem:[#allocation4 + $0x2] ss:$3 sm:$0xff] }
 0x329   : > { %v2594_v3 = vmax.f32 %v2587_v49, %v2591_v1  ;;  %2584 = vst.msk [vmem:[#allocation4 + $0x18] sm:$0xff] %vm2580_vm5, %v2577_v14  ;;  %v2487_v5 = vadd.f32 %v2477_v38, %v2412_v33 }
 0x32b   : > { %v2600_v30 = vmax.f32 %v2594_v3, %v2597_v31  ;;  %v2562_v54 = vadd.f32 %v2552_v2, %v2487_v5 }
 0x32d   : > { %2602 = vst.msk [vmem:[%s224_s12] sm:$0xff] %vm2580_vm5, %v2600_v30  ;;  %v2572_v44 = vadd.f32 %v3097_v7, %v2562_v54 }
 0x32f   : > { %v2578_v18 = vmax.f32 %v2572_v44, 0.0 }
 0x330   : > { %v2480_v63 = vpop.f32.mrf.mxu1 }
 0x331   : > { %2585 = vst.msk [vmem:[#allocation4 + $0x20] sm:$0xff] %vm2580_vm5, %v2578_v18  ;;  %v2488_v52 = vadd.f32 %v2480_v63, %v2413_v46 }
 0x333   : > { %v2563_v62 = vadd.f32 %v2555_v61, %v2488_v52 }
 0x335   : > { %v2573_v40 = vadd.f32 %v3097_v7, %v2563_v62 }
 0x337   : > { %v2579_v37 = vmax.f32 %v2573_v40, 0.0 }
 0x339   : > { %2586 = vst.msk [vmem:[#allocation4 + $0x28] sm:$0xff] %vm2580_vm5, %v2579_v37 }
 0x340   : > { %v2589_v35 = vld [vmem:[#allocation4 + $0x18] ss:$3 sm:$0xff]  ;;  %v2593_v29 = vld [vmem:[#allocation4 + $0x19] ss:$3 sm:$0xff]  ;;  %v2599_v43 = vld [vmem:[#allocation4 + $0x1a] ss:$3 sm:$0xff] }
 0x341   : > { %v2595_v19 = vmax.f32 %v2589_v35, %v2593_v29 }
 0x343   : > { %v2601_v8 = vmax.f32 %v2595_v19, %v2599_v43 }
 0x345   : > { %2603 = vst.msk [vmem:[%s224_s12 + $0x8] sm:$0xff] %vm2580_vm5, %v2601_v8 }
 0x346 PF: > { %s15_s18 = sadd.s32 1, %s3105_s18  }
 0x347   : > { %p12_p4 = scmp.ge.s32.totalorder %s15_s18, 4  }
 0x349   :  { %14 = sbr.rel (!%p12_p4) target bundleno = 1 (0x1), region = 331 }

</bundles_post_ra>
